<compile_context>
chip_gen: v5e
topology: v5e:2x2
jax: 0.10.0
libtpu: 0.0.40
codegen_flags: <defaults>
</compile_context>

<pallas_src>
import functools
import math

import jax
import jax.numpy as jnp
from jax.experimental import pallas as pl
from jax.experimental.pallas import tpu as pltpu


def _round_up(v, m):
    return (v + m - 1) // m * m


def _lconv_kernel(x_ref, w_ref, b_ref, o_ref, *, FO, W_, KS, AS, AH, D_pad, N_pad, TL):
    # x_ref: (ROWSP, Ep*D_pad) bf16  -- halo'd activation slab, columns (e major, d minor)
    # w_ref: (W_, Ep*D_pad, N_pad) bf16
    # b_ref: (FO, N_pad) f32         -- precomputed bias window sums
    # o_ref: (TL, FO*N_pad) bf16     -- output tile, columns (fo major, n minor)
    kw = AH * D_pad
    for fo in range(FO):
        c0 = fo * AS * D_pad
        acc = jnp.zeros((TL, N_pad), jnp.float32)
        for w in range(W_):
            if KS == 1:
                lhs = x_ref[w:w + TL, c0:c0 + kw]
            else:
                # TODO(synk): KS > 1 (strided t) path is not exercised by the demo below.
                lhs = x_ref[w:w + (TL - 1) * KS + 1, c0:c0 + kw][::KS]
            rhs = w_ref[w, c0:c0 + kw, :]
            acc = acc + jnp.dot(lhs, rhs, preferred_element_type=jnp.float32)
        acc = acc + b_ref[fo:fo + 1, :]
        o_ref[:, fo * N_pad:(fo + 1) * N_pad] = acc.astype(o_ref.dtype)


def linear_conv2d_forward(x, weight, add_bias, *, groups, kernel_width, kernel_stride,
                          activate_height, activate_stride, padding=(0, 0, 0, 0)):
    B, C, E, L = x.shape
    O = weight.shape[0]
    G = groups
    D = C // G
    N = O // G
    W_ = kernel_width
    KS = kernel_stride
    AH = activate_height
    AS = activate_stride
    pad_l, pad_r, pad_t, pad_b = padding

    Lp = L + pad_l + pad_r
    T = (Lp - W_) // KS + 1
    Ep = E + pad_t + pad_b
    FO = (Ep - AH) // AS + 1

    # Pad the per-group depth so the per-(fo, w) MXU contraction length AH*D_pad is a
    # multiple of 8 (usually a no-op at realistic sizes; cheap at toy sizes).
    D_pad = _round_up(D, 8 // math.gcd(AH, 8))
    EpD = Ep * D_pad
    N_pad = _round_up(N, 128)          # lane-dense, unmasked per-fo output stores

    # ----------------------------- tile selection (review #3/#4/#6) -----------------------------
    # Largest t-tile whose double-buffered working set fits a budget that is safe on
    # v5e/v6e (128 MiB VMEM) and v7x (64 MiB physical).
    budget = 20 * 1024 * 1024
    t_full = _round_up(T, 16)
    TL = 16
    for cand in (512, 256, 128, 64, 32, 16):
        tl = min(cand, t_full)
        rows = _round_up((tl - 1) * KS + W_, 16)
        per_step = 2 * (rows * EpD * 2 + tl * FO * N_pad * 2          # x slab + out (bf16)
                        + W_ * EpD * N_pad * 2 + FO * N_pad * 4)      # weight (bf16) + bias
        if per_step <= budget or cand == 16:
            TL = tl
            break
    MB = -(-T // TL)
    if B * G * MB < 2 and T > 16:      # give both v7x TensorCores at least one block
        TL = _round_up(-(-T // 2), 16)
        MB = -(-T // TL)
    T_pad = MB * TL
    MBALL = B * MB
    ROWS = (TL - 1) * KS + W_
    ROWSP = _round_up(ROWS, 16)
    Lp_need = (T_pad - 1) * KS + W_

    # ----------------- activation: halo'd block layout, NO W_-fold im2col (review #1) -----------------
    # Xb[g, b*MB+m, r, e*D_pad+d] = x_pad[b, g*D+d, e, m*TL*KS + r]
    extra_r = max(0, Lp_need - Lp)
    Lcur = Lp + extra_r
    x5 = x.reshape(B, G, D, E, L)
    x5 = jnp.pad(x5, ((0, 0), (0, 0), (0, D_pad - D), (pad_t, pad_b),
                      (pad_l, pad_r + extra_r))).astype(jnp.bfloat16)
    Xr = jnp.transpose(x5, (1, 0, 4, 3, 2)).reshape(G, B, Lcur, EpD)
    # TODO(synk): this relayout still costs ~|x| of HBM round trip; a manual-DMA kernel
    # (pl.ANY input + pltpu.make_async_copy windows) could read x in its native layout.
    gidx = jnp.minimum((jnp.arange(MB) * (TL * KS))[:, None] + jnp.arange(ROWSP)[None, :],
                       Lcur - 1)
    Xb = Xr[:, :, gidx, :].reshape(G, MBALL, ROWSP, EpD)

    # -------------------- weight: stored once, no fo mask / duplication (review #2) --------------------
    w5 = weight.reshape(G, N, D, E, W_)
    w5 = jnp.pad(w5, ((0, 0), (0, 0), (0, D_pad - D), (pad_t, pad_b), (0, 0)))
    Wk = jnp.transpose(w5, (0, 4, 3, 2, 1)).reshape(G, W_, EpD, N)
    Wk = jnp.pad(Wk, ((0, 0), (0, 0), (0, 0), (0, N_pad - N))).astype(jnp.bfloat16)

    if add_bias is not None:
        b4 = jnp.pad(add_bias, ((0, 0), (0, 0), (pad_t, pad_b), (0, 0)))   # (O, D, Ep, W)
        bsum_e = b4.sum(axis=(1, 3))                                       # (O, Ep)
        bwin = jnp.stack([bsum_e[:, fo * AS:fo * AS + AH].sum(axis=1)
                          for fo in range(FO)], axis=1)                    # (O, FO)
        bias_gfn = jnp.transpose(bwin.reshape(G, N, FO), (0, 2, 1))        # (G, FO, N)
    else:
        bias_gfn = jnp.zeros((G, FO, N), jnp.float32)
    bias_gfn = jnp.pad(bias_gfn.astype(jnp.float32), ((0, 0), (0, 0), (0, N_pad - N)))

    # --------------------------------------- pallas_call ---------------------------------------
    kern = functools.partial(_lconv_kernel, FO=FO, W_=W_, KS=KS, AS=AS, AH=AH,
                             D_pad=D_pad, N_pad=N_pad, TL=TL)
    cost = pl.CostEstimate(
        flops=int(2 * G * MBALL * TL * FO * W_ * AH * D_pad * N_pad),
        transcendentals=0,
        bytes_accessed=int(Xb.size * 2 + Wk.size * 2 + bias_gfn.size * 4
                           + G * MBALL * TL * FO * N_pad * 2),
    )
    per_step = 2 * (ROWSP * EpD * 2 + TL * FO * N_pad * 2
                    + W_ * EpD * N_pad * 2 + FO * N_pad * 4)
    vmem_limit = int(min(48 * 1024 * 1024,
                         max(32 * 1024 * 1024, per_step + (4 << 20))))

    out = pl.pallas_call(
        kern,
        out_shape=jax.ShapeDtypeStruct((G, MBALL * TL, FO * N_pad), jnp.bfloat16),
        grid_spec=pltpu.PrefetchScalarGridSpec(
            num_scalar_prefetch=0,
            grid=(G, MBALL),
            in_specs=[
                pl.BlockSpec((pl.Squeezed(), pl.Squeezed(), ROWSP, EpD),
                             lambda g, m: (g, m, 0, 0)),
                pl.BlockSpec((pl.Squeezed(), W_, EpD, N_pad),
                             lambda g, m: (g, 0, 0, 0)),
                pl.BlockSpec((pl.Squeezed(), FO, N_pad),
                             lambda g, m: (g, 0, 0)),
            ],
            out_specs=pl.BlockSpec((pl.Squeezed(), TL, FO * N_pad),
                                   lambda g, m: (g, m, 0)),
        ),
        compiler_params=pltpu.CompilerParams(
            dimension_semantics=("parallel", "parallel"),
            vmem_limit_bytes=vmem_limit,
        ),
        cost_estimate=cost,
    )(Xb, Wk, bias_gfn)

    # ------------------------------- glue: back to (B, O, FO, T) -------------------------------
    out = out.reshape(G, B, T_pad, FO, N_pad)[:, :, :T, :, :N]
    y = jnp.transpose(out, (1, 0, 4, 3, 2)).reshape(B, G * N, FO, T)
    return y.astype(x.dtype)


def reference_forward(x, weight, add_bias, *, groups, kernel_width, kernel_stride,
                      activate_height, activate_stride, padding=(0, 0, 0, 0)):
    """Pure-jnp transliteration of the PyTorch module forward (for verification)."""
    B, C, E, L = x.shape
    O = weight.shape[0]
    G, D, N = groups, C // groups, O // groups
    W_, KS, AH, AS = kernel_width, kernel_stride, activate_height, activate_stride
    pad_l, pad_r, pad_t, pad_b = padding
    xh = jnp.pad(x, ((0, 0), (0, 0), (0, 0), (pad_l, pad_r)))
    Lp = xh.shape[-1]
    T = (Lp - W_) // KS + 1
    x_unf = jnp.stack([xh[..., t * KS:t * KS + W_] for t in range(T)], axis=3)  # (B,C,E,T,W)
    x_r = x_unf.reshape(B, G, D, E, T, W_).transpose(0, 4, 1, 2, 3, 5)          # (B,T,G,D,E,W)
    w_r = weight.reshape(G, N, D, E, W_)
    prod = x_r[:, :, :, None] * w_r[None, None]                                  # (B,T,G,N,D,E,W)
    if add_bias is not None:
        prod = prod + add_bias.reshape(G, N, D, E, W_)[None, None]
    prod = prod.reshape(B, T, O, D, E, W_)
    prod = jnp.pad(prod, ((0, 0), (0, 0), (0, 0), (0, 0), (pad_t, pad_b), (0, 0)))
    Ep = prod.shape[4]
    FO = (Ep - AH) // AS + 1
    y = jnp.stack([prod[:, :, :, :, fo * AS:fo * AS + AH, :].sum(axis=(3, 4, 5))
                   for fo in range(FO)], axis=-1)                                # (B,T,O,FO)
    return y.transpose(0, 2, 3, 1)                                               # (B,O,FO,T)


if __name__ == "__main__":
    # Module hyper-params (small, consistent with the PyTorch __init__ asserts)
    B = 2            # batch
    C = 4            # input_channels
    G = 2            # groups        -> D = 2
    O = 4            # out_channels  -> N = 2
    E = 16           # embedding (vertical / "f" axis)
    L = 8            # sequence length (horizontal axis that gets unfolded)
    W_ = 3           # kernel_width
    KS = 1           # kernel_stride
    AH = 2           # activate_height
    AS = 2           # activate_stride
    BIAS = False     # module default
    PADDING = (0, 0, 0, 0)

    D = C // G
    key = jax.random.PRNGKey(0)
    kx, kw, kb = jax.random.split(key, 3)

    x = jax.random.normal(kx, (B, C, E, L), dtype=jnp.float32)

    # Deterministic xavier_uniform-style init for weight of shape (O, D, E, W)
    fan_in = D * E * W_
    fan_out = O * E * W_
    bound = (6.0 / (fan_in + fan_out)) ** 0.5
    weight = jax.random.uniform(kw, (O, D, E, W_), minval=-bound, maxval=bound,
                                dtype=jnp.float32)
    add_bias = None
    if BIAS:
        add_bias = jax.random.uniform(kb, (O, D, E, W_), minval=-bound, maxval=bound,
                                      dtype=jnp.float32)

    kwargs = dict(groups=G, kernel_width=W_, kernel_stride=KS,
                  activate_height=AH, activate_stride=AS, padding=PADDING)

    fwd = jax.jit(functools.partial(linear_conv2d_forward, **kwargs))
    y = fwd(x, weight, add_bias)
    y = jax.block_until_ready(y)

    y_ref = reference_forward(x, weight, add_bias, **kwargs)
    y_ref = jax.block_until_ready(y_ref)

    T = (L + PADDING[0] + PADDING[1] - W_) // KS + 1
    FO = (E + PADDING[2] + PADDING[3] - AH) // AS + 1
    assert y.shape == (B, O, FO, T), f"bad output shape {y.shape}"
    # bf16 operands / bf16 kernel output with f32 MXU accumulation vs pure-f32 reference
    assert jnp.allclose(y.astype(jnp.float32), y_ref, atol=3e-2, rtol=3e-2), \
        "mismatch vs reference"

    print("KERNEL_OK")
</pallas_src>

<mosaic_0001>
module attributes {stable_mosaic.version = 11 : i64} {
  func.func @_lconv_kernel(%arg0: i32, %arg1: i32, %arg2: memref<1x1x32x64xbf16, #tpu.memory_space<vmem>>, %arg3: memref<1x3x64x128xbf16, #tpu.memory_space<vmem>>, %arg4: memref<1x8x128xf32, #tpu.memory_space<vmem>>, %arg5: memref<1x16x1024xbf16, #tpu.memory_space<vmem>>) attributes {dimension_semantics = [#tpu.dimension_semantics<parallel>, #tpu.dimension_semantics<parallel>], iteration_bounds = array<i64: 2, 2>, scalar_prefetch = 0 : i64, scratch_operands = 0 : i64, tpu.core_type = #tpu.core_type<tc>, window_params = [{transform_indices = @transform_0, window_bounds = array<i64: 1, 1, 32, 64>}, {transform_indices = @transform_1, window_bounds = array<i64: 1, 3, 64, 128>}, {transform_indices = @transform_2, window_bounds = array<i64: 1, 8, 128>}, {transform_indices = @transform_3, window_bounds = array<i64: 1, 16, 1024>}]} {
    %cst = arith.constant 0.000000e+00 : f32
    %0 = vector.broadcast %cst : f32 to vector<16x128xf32>
    %c0 = arith.constant 0 : index
    %c0_0 = arith.constant 0 : index
    %c0_1 = arith.constant 0 : index
    %c0_2 = arith.constant 0 : index
    %1 = vector.load %arg2[%c0, %c0_0, %c0_1, %c0_2] : memref<1x1x32x64xbf16, #tpu.memory_space<vmem>>, vector<1x1x16x8xbf16>
    %2 = vector.shape_cast %1 : vector<1x1x16x8xbf16> to vector<16x8xbf16>
    %c0_3 = arith.constant 0 : index
    %c0_4 = arith.constant 0 : index
    %c0_5 = arith.constant 0 : index
    %c0_6 = arith.constant 0 : index
    %3 = vector.load %arg3[%c0_3, %c0_4, %c0_5, %c0_6] : memref<1x3x64x128xbf16, #tpu.memory_space<vmem>>, vector<1x1x8x128xbf16>
    %4 = vector.shape_cast %3 : vector<1x1x8x128xbf16> to vector<8x128xbf16>
    %cst_7 = arith.constant dense<0.000000e+00> : vector<16x128xf32>
    %5 = tpu.matmul %2, %4, %cst_7 {dimension_numbers = #tpu.dot_dimension_numbers<[1], [0], [0], [1], [0, 0, 1, 1], [], []>} : vector<16x8xbf16>, vector<8x128xbf16>, vector<16x128xf32> -> vector<16x128xf32>
    %6 = arith.addf %0, %5 : vector<16x128xf32>
    %c0_8 = arith.constant 0 : index
    %c0_9 = arith.constant 0 : index
    %c1 = arith.constant 1 : index
    %c0_10 = arith.constant 0 : index
    %7 = vector.load %arg2[%c0_8, %c0_9, %c1, %c0_10] : memref<1x1x32x64xbf16, #tpu.memory_space<vmem>>, vector<1x1x16x8xbf16>
    %8 = vector.shape_cast %7 : vector<1x1x16x8xbf16> to vector<16x8xbf16>
    %c0_11 = arith.constant 0 : index
    %c1_12 = arith.constant 1 : index
    %c0_13 = arith.constant 0 : index
    %c0_14 = arith.constant 0 : index
    %9 = vector.load %arg3[%c0_11, %c1_12, %c0_13, %c0_14] : memref<1x3x64x128xbf16, #tpu.memory_space<vmem>>, vector<1x1x8x128xbf16>
    %10 = vector.shape_cast %9 : vector<1x1x8x128xbf16> to vector<8x128xbf16>
    %cst_15 = arith.constant dense<0.000000e+00> : vector<16x128xf32>
    %11 = tpu.matmul %8, %10, %cst_15 {dimension_numbers = #tpu.dot_dimension_numbers<[1], [0], [0], [1], [0, 0, 1, 1], [], []>} : vector<16x8xbf16>, vector<8x128xbf16>, vector<16x128xf32> -> vector<16x128xf32>
    %12 = arith.addf %6, %11 : vector<16x128xf32>
    %c0_16 = arith.constant 0 : index
    %c0_17 = arith.constant 0 : index
    %c2 = arith.constant 2 : index
    %c0_18 = arith.constant 0 : index
    %13 = vector.load %arg2[%c0_16, %c0_17, %c2, %c0_18] : memref<1x1x32x64xbf16, #tpu.memory_space<vmem>>, vector<1x1x16x8xbf16>
    %14 = vector.shape_cast %13 : vector<1x1x16x8xbf16> to vector<16x8xbf16>
    %c0_19 = arith.constant 0 : index
    %c2_20 = arith.constant 2 : index
    %c0_21 = arith.constant 0 : index
    %c0_22 = arith.constant 0 : index
    %15 = vector.load %arg3[%c0_19, %c2_20, %c0_21, %c0_22] : memref<1x3x64x128xbf16, #tpu.memory_space<vmem>>, vector<1x1x8x128xbf16>
    %16 = vector.shape_cast %15 : vector<1x1x8x128xbf16> to vector<8x128xbf16>
    %cst_23 = arith.constant dense<0.000000e+00> : vector<16x128xf32>
    %17 = tpu.matmul %14, %16, %cst_23 {dimension_numbers = #tpu.dot_dimension_numbers<[1], [0], [0], [1], [0, 0, 1, 1], [], []>} : vector<16x8xbf16>, vector<8x128xbf16>, vector<16x128xf32> -> vector<16x128xf32>
    %18 = arith.addf %12, %17 : vector<16x128xf32>
    %c0_24 = arith.constant 0 : index
    %c0_25 = arith.constant 0 : index
    %c0_26 = arith.constant 0 : index
    %19 = vector.load %arg4[%c0_24, %c0_25, %c0_26] : memref<1x8x128xf32, #tpu.memory_space<vmem>>, vector<1x1x128xf32>
    %20 = vector.shape_cast %19 : vector<1x1x128xf32> to vector<1x128xf32>
    %21 = vector.broadcast %20 : vector<1x128xf32> to vector<16x128xf32>
    %22 = arith.addf %18, %21 : vector<16x128xf32>
    %23 = arith.truncf %22 : vector<16x128xf32> to vector<16x128xbf16>
    %c0_27 = arith.constant 0 : index
    %c0_28 = arith.constant 0 : index
    %c0_29 = arith.constant 0 : index
    %24 = vector.load %arg5[%c0_27, %c0_28, %c0_29] : memref<1x16x1024xbf16, #tpu.memory_space<vmem>>, vector<1x16x128xbf16>
    %25 = vector.shape_cast %24 : vector<1x16x128xbf16> to vector<16x128xbf16>
    %26 = vector.shape_cast %23 : vector<16x128xbf16> to vector<1x16x128xbf16>
    tpu.vector_store %arg5[%c0_27, %c0_28, %c0_29], %26 {strides = array<i32>} : memref<1x16x1024xbf16, #tpu.memory_space<vmem>>, vector<1x16x128xbf16>,
    %cst_30 = arith.constant 0.000000e+00 : f32
    %27 = vector.broadcast %cst_30 : f32 to vector<16x128xf32>
    %c0_31 = arith.constant 0 : index
    %c0_32 = arith.constant 0 : index
    %c0_33 = arith.constant 0 : index
    %c8 = arith.constant 8 : index
    %28 = vector.load %arg2[%c0_31, %c0_32, %c0_33, %c8] : memref<1x1x32x64xbf16, #tpu.memory_space<vmem>>, vector<1x1x16x8xbf16>
    %29 = vector.shape_cast %28 : vector<1x1x16x8xbf16> to vector<16x8xbf16>
    %c0_34 = arith.constant 0 : index
    %c0_35 = arith.constant 0 : index
    %c8_36 = arith.constant 8 : index
    %c0_37 = arith.constant 0 : index
    %30 = vector.load %arg3[%c0_34, %c0_35, %c8_36, %c0_37] : memref<1x3x64x128xbf16, #tpu.memory_space<vmem>>, vector<1x1x8x128xbf16>
    %31 = vector.shape_cast %30 : vector<1x1x8x128xbf16> to vector<8x128xbf16>
    %cst_38 = arith.constant dense<0.000000e+00> : vector<16x128xf32>
    %32 = tpu.matmul %29, %31, %cst_38 {dimension_numbers = #tpu.dot_dimension_numbers<[1], [0], [0], [1], [0, 0, 1, 1], [], []>} : vector<16x8xbf16>, vector<8x128xbf16>, vector<16x128xf32> -> vector<16x128xf32>
    %33 = arith.addf %27, %32 : vector<16x128xf32>
    %c0_39 = arith.constant 0 : index
    %c0_40 = arith.constant 0 : index
    %c1_41 = arith.constant 1 : index
    %c8_42 = arith.constant 8 : index
    %34 = vector.load %arg2[%c0_39, %c0_40, %c1_41, %c8_42] : memref<1x1x32x64xbf16, #tpu.memory_space<vmem>>, vector<1x1x16x8xbf16>
    %35 = vector.shape_cast %34 : vector<1x1x16x8xbf16> to vector<16x8xbf16>
    %c0_43 = arith.constant 0 : index
    %c1_44 = arith.constant 1 : index
    %c8_45 = arith.constant 8 : index
    %c0_46 = arith.constant 0 : index
    %36 = vector.load %arg3[%c0_43, %c1_44, %c8_45, %c0_46] : memref<1x3x64x128xbf16, #tpu.memory_space<vmem>>, vector<1x1x8x128xbf16>
    %37 = vector.shape_cast %36 : vector<1x1x8x128xbf16> to vector<8x128xbf16>
    %cst_47 = arith.constant dense<0.000000e+00> : vector<16x128xf32>
    %38 = tpu.matmul %35, %37, %cst_47 {dimension_numbers = #tpu.dot_dimension_numbers<[1], [0], [0], [1], [0, 0, 1, 1], [], []>} : vector<16x8xbf16>, vector<8x128xbf16>, vector<16x128xf32> -> vector<16x128xf32>
    %39 = arith.addf %33, %38 : vector<16x128xf32>
    %c0_48 = arith.constant 0 : index
    %c0_49 = arith.constant 0 : index
    %c2_50 = arith.constant 2 : index
    %c8_51 = arith.constant 8 : index
    %40 = vector.load %arg2[%c0_48, %c0_49, %c2_50, %c8_51] : memref<1x1x32x64xbf16, #tpu.memory_space<vmem>>, vector<1x1x16x8xbf16>
    %41 = vector.shape_cast %40 : vector<1x1x16x8xbf16> to vector<16x8xbf16>
    %c0_52 = arith.constant 0 : index
    %c2_53 = arith.constant 2 : index
    %c8_54 = arith.constant 8 : index
    %c0_55 = arith.constant 0 : index
    %42 = vector.load %arg3[%c0_52, %c2_53, %c8_54, %c0_55] : memref<1x3x64x128xbf16, #tpu.memory_space<vmem>>, vector<1x1x8x128xbf16>
    %43 = vector.shape_cast %42 : vector<1x1x8x128xbf16> to vector<8x128xbf16>
    %cst_56 = arith.constant dense<0.000000e+00> : vector<16x128xf32>
    %44 = tpu.matmul %41, %43, %cst_56 {dimension_numbers = #tpu.dot_dimension_numbers<[1], [0], [0], [1], [0, 0, 1, 1], [], []>} : vector<16x8xbf16>, vector<8x128xbf16>, vector<16x128xf32> -> vector<16x128xf32>
    %45 = arith.addf %39, %44 : vector<16x128xf32>
    %c0_57 = arith.constant 0 : index
    %c1_58 = arith.constant 1 : index
    %c0_59 = arith.constant 0 : index
    %46 = vector.load %arg4[%c0_57, %c1_58, %c0_59] : memref<1x8x128xf32, #tpu.memory_space<vmem>>, vector<1x1x128xf32>
    %47 = vector.shape_cast %46 : vector<1x1x128xf32> to vector<1x128xf32>
    %48 = vector.broadcast %47 : vector<1x128xf32> to vector<16x128xf32>
    %49 = arith.addf %45, %48 : vector<16x128xf32>
    %50 = arith.truncf %49 : vector<16x128xf32> to vector<16x128xbf16>
    %c0_60 = arith.constant 0 : index
    %c0_61 = arith.constant 0 : index
    %c128 = arith.constant 128 : index
    %51 = vector.load %arg5[%c0_60, %c0_61, %c128] : memref<1x16x1024xbf16, #tpu.memory_space<vmem>>, vector<1x16x128xbf16>
    %52 = vector.shape_cast %51 : vector<1x16x128xbf16> to vector<16x128xbf16>
    %53 = vector.shape_cast %50 : vector<16x128xbf16> to vector<1x16x128xbf16>
    tpu.vector_store %arg5[%c0_60, %c0_61, %c128], %53 {strides = array<i32>} : memref<1x16x1024xbf16, #tpu.memory_space<vmem>>, vector<1x16x128xbf16>,
    %cst_62 = arith.constant 0.000000e+00 : f32
    %54 = vector.broadcast %cst_62 : f32 to vector<16x128xf32>
    %c0_63 = arith.constant 0 : index
    %c0_64 = arith.constant 0 : index
    %c0_65 = arith.constant 0 : index
    %c16 = arith.constant 16 : index
    %55 = vector.load %arg2[%c0_63, %c0_64, %c0_65, %c16] : memref<1x1x32x64xbf16, #tpu.memory_space<vmem>>, vector<1x1x16x8xbf16>
    %56 = vector.shape_cast %55 : vector<1x1x16x8xbf16> to vector<16x8xbf16>
    %c0_66 = arith.constant 0 : index
    %c0_67 = arith.constant 0 : index
    %c16_68 = arith.constant 16 : index
    %c0_69 = arith.constant 0 : index
    %57 = vector.load %arg3[%c0_66, %c0_67, %c16_68, %c0_69] : memref<1x3x64x128xbf16, #tpu.memory_space<vmem>>, vector<1x1x8x128xbf16>
    %58 = vector.shape_cast %57 : vector<1x1x8x128xbf16> to vector<8x128xbf16>
    %cst_70 = arith.constant dense<0.000000e+00> : vector<16x128xf32>
    %59 = tpu.matmul %56, %58, %cst_70 {dimension_numbers = #tpu.dot_dimension_numbers<[1], [0], [0], [1], [0, 0, 1, 1], [], []>} : vector<16x8xbf16>, vector<8x128xbf16>, vector<16x128xf32> -> vector<16x128xf32>
    %60 = arith.addf %54, %59 : vector<16x128xf32>
    %c0_71 = arith.constant 0 : index
    %c0_72 = arith.constant 0 : index
    %c1_73 = arith.constant 1 : index
    %c16_74 = arith.constant 16 : index
    %61 = vector.load %arg2[%c0_71, %c0_72, %c1_73, %c16_74] : memref<1x1x32x64xbf16, #tpu.memory_space<vmem>>, vector<1x1x16x8xbf16>
    %62 = vector.shape_cast %61 : vector<1x1x16x8xbf16> to vector<16x8xbf16>
    %c0_75 = arith.constant 0 : index
    %c1_76 = arith.constant 1 : index
    %c16_77 = arith.constant 16 : index
    %c0_78 = arith.constant 0 : index
    %63 = vector.load %arg3[%c0_75, %c1_76, %c16_77, %c0_78] : memref<1x3x64x128xbf16, #tpu.memory_space<vmem>>, vector<1x1x8x128xbf16>
    %64 = vector.shape_cast %63 : vector<1x1x8x128xbf16> to vector<8x128xbf16>
    %cst_79 = arith.constant dense<0.000000e+00> : vector<16x128xf32>
    %65 = tpu.matmul %62, %64, %cst_79 {dimension_numbers = #tpu.dot_dimension_numbers<[1], [0], [0], [1], [0, 0, 1, 1], [], []>} : vector<16x8xbf16>, vector<8x128xbf16>, vector<16x128xf32> -> vector<16x128xf32>
    %66 = arith.addf %60, %65 : vector<16x128xf32>
    %c0_80 = arith.constant 0 : index
    %c0_81 = arith.constant 0 : index
    %c2_82 = arith.constant 2 : index
    %c16_83 = arith.constant 16 : index
    %67 = vector.load %arg2[%c0_80, %c0_81, %c2_82, %c16_83] : memref<1x1x32x64xbf16, #tpu.memory_space<vmem>>, vector<1x1x16x8xbf16>
    %68 = vector.shape_cast %67 : vector<1x1x16x8xbf16> to vector<16x8xbf16>
    %c0_84 = arith.constant 0 : index
    %c2_85 = arith.constant 2 : index
    %c16_86 = arith.constant 16 : index
    %c0_87 = arith.constant 0 : index
    %69 = vector.load %arg3[%c0_84, %c2_85, %c16_86, %c0_87] : memref<1x3x64x128xbf16, #tpu.memory_space<vmem>>, vector<1x1x8x128xbf16>
    %70 = vector.shape_cast %69 : vector<1x1x8x128xbf16> to vector<8x128xbf16>
    %cst_88 = arith.constant dense<0.000000e+00> : vector<16x128xf32>
    %71 = tpu.matmul %68, %70, %cst_88 {dimension_numbers = #tpu.dot_dimension_numbers<[1], [0], [0], [1], [0, 0, 1, 1], [], []>} : vector<16x8xbf16>, vector<8x128xbf16>, vector<16x128xf32> -> vector<16x128xf32>
    %72 = arith.addf %66, %71 : vector<16x128xf32>
    %c0_89 = arith.constant 0 : index
    %c2_90 = arith.constant 2 : index
    %c0_91 = arith.constant 0 : index
    %73 = vector.load %arg4[%c0_89, %c2_90, %c0_91] : memref<1x8x128xf32, #tpu.memory_space<vmem>>, vector<1x1x128xf32>
    %74 = vector.shape_cast %73 : vector<1x1x128xf32> to vector<1x128xf32>
    %75 = vector.broadcast %74 : vector<1x128xf32> to vector<16x128xf32>
    %76 = arith.addf %72, %75 : vector<16x128xf32>
    %77 = arith.truncf %76 : vector<16x128xf32> to vector<16x128xbf16>
    %c0_92 = arith.constant 0 : index
    %c0_93 = arith.constant 0 : index
    %c256 = arith.constant 256 : index
    %78 = vector.load %arg5[%c0_92, %c0_93, %c256] : memref<1x16x1024xbf16, #tpu.memory_space<vmem>>, vector<1x16x128xbf16>
    %79 = vector.shape_cast %78 : vector<1x16x128xbf16> to vector<16x128xbf16>
    %80 = vector.shape_cast %77 : vector<16x128xbf16> to vector<1x16x128xbf16>
    tpu.vector_store %arg5[%c0_92, %c0_93, %c256], %80 {strides = array<i32>} : memref<1x16x1024xbf16, #tpu.memory_space<vmem>>, vector<1x16x128xbf16>,
    %cst_94 = arith.constant 0.000000e+00 : f32
    %81 = vector.broadcast %cst_94 : f32 to vector<16x128xf32>
    %c0_95 = arith.constant 0 : index
    %c0_96 = arith.constant 0 : index
    %c0_97 = arith.constant 0 : index
    %c24 = arith.constant 24 : index
    %82 = vector.load %arg2[%c0_95, %c0_96, %c0_97, %c24] : memref<1x1x32x64xbf16, #tpu.memory_space<vmem>>, vector<1x1x16x8xbf16>
    %83 = vector.shape_cast %82 : vector<1x1x16x8xbf16> to vector<16x8xbf16>
    %c0_98 = arith.constant 0 : index
    %c0_99 = arith.constant 0 : index
    %c24_100 = arith.constant 24 : index
    %c0_101 = arith.constant 0 : index
    %84 = vector.load %arg3[%c0_98, %c0_99, %c24_100, %c0_101] : memref<1x3x64x128xbf16, #tpu.memory_space<vmem>>, vector<1x1x8x128xbf16>
    %85 = vector.shape_cast %84 : vector<1x1x8x128xbf16> to vector<8x128xbf16>
    %cst_102 = arith.constant dense<0.000000e+00> : vector<16x128xf32>
    %86 = tpu.matmul %83, %85, %cst_102 {dimension_numbers = #tpu.dot_dimension_numbers<[1], [0], [0], [1], [0, 0, 1, 1], [], []>} : vector<16x8xbf16>, vector<8x128xbf16>, vector<16x128xf32> -> vector<16x128xf32>
    %87 = arith.addf %81, %86 : vector<16x128xf32>
    %c0_103 = arith.constant 0 : index
    %c0_104 = arith.constant 0 : index
    %c1_105 = arith.constant 1 : index
    %c24_106 = arith.constant 24 : index
    %88 = vector.load %arg2[%c0_103, %c0_104, %c1_105, %c24_106] : memref<1x1x32x64xbf16, #tpu.memory_space<vmem>>, vector<1x1x16x8xbf16>
    %89 = vector.shape_cast %88 : vector<1x1x16x8xbf16> to vector<16x8xbf16>
    %c0_107 = arith.constant 0 : index
    %c1_108 = arith.constant 1 : index
    %c24_109 = arith.constant 24 : index
    %c0_110 = arith.constant 0 : index
    %90 = vector.load %arg3[%c0_107, %c1_108, %c24_109, %c0_110] : memref<1x3x64x128xbf16, #tpu.memory_space<vmem>>, vector<1x1x8x128xbf16>
    %91 = vector.shape_cast %90 : vector<1x1x8x128xbf16> to vector<8x128xbf16>
    %cst_111 = arith.constant dense<0.000000e+00> : vector<16x128xf32>
    %92 = tpu.matmul %89, %91, %cst_111 {dimension_numbers = #tpu.dot_dimension_numbers<[1], [0], [0], [1], [0, 0, 1, 1], [], []>} : vector<16x8xbf16>, vector<8x128xbf16>, vector<16x128xf32> -> vector<16x128xf32>
    %93 = arith.addf %87, %92 : vector<16x128xf32>
    %c0_112 = arith.constant 0 : index
    %c0_113 = arith.constant 0 : index
    %c2_114 = arith.constant 2 : index
    %c24_115 = arith.constant 24 : index
    %94 = vector.load %arg2[%c0_112, %c0_113, %c2_114, %c24_115] : memref<1x1x32x64xbf16, #tpu.memory_space<vmem>>, vector<1x1x16x8xbf16>
    %95 = vector.shape_cast %94 : vector<1x1x16x8xbf16> to vector<16x8xbf16>
    %c0_116 = arith.constant 0 : index
    %c2_117 = arith.constant 2 : index
    %c24_118 = arith.constant 24 : index
    %c0_119 = arith.constant 0 : index
    %96 = vector.load %arg3[%c0_116, %c2_117, %c24_118, %c0_119] : memref<1x3x64x128xbf16, #tpu.memory_space<vmem>>, vector<1x1x8x128xbf16>
    %97 = vector.shape_cast %96 : vector<1x1x8x128xbf16> to vector<8x128xbf16>
    %cst_120 = arith.constant dense<0.000000e+00> : vector<16x128xf32>
    %98 = tpu.matmul %95, %97, %cst_120 {dimension_numbers = #tpu.dot_dimension_numbers<[1], [0], [0], [1], [0, 0, 1, 1], [], []>} : vector<16x8xbf16>, vector<8x128xbf16>, vector<16x128xf32> -> vector<16x128xf32>
    %99 = arith.addf %93, %98 : vector<16x128xf32>
    %c0_121 = arith.constant 0 : index
    %c3 = arith.constant 3 : index
    %c0_122 = arith.constant 0 : index
    %100 = vector.load %arg4[%c0_121, %c3, %c0_122] : memref<1x8x128xf32, #tpu.memory_space<vmem>>, vector<1x1x128xf32>
    %101 = vector.shape_cast %100 : vector<1x1x128xf32> to vector<1x128xf32>
    %102 = vector.broadcast %101 : vector<1x128xf32> to vector<16x128xf32>
    %103 = arith.addf %99, %102 : vector<16x128xf32>
    %104 = arith.truncf %103 : vector<16x128xf32> to vector<16x128xbf16>
    %c0_123 = arith.constant 0 : index
    %c0_124 = arith.constant 0 : index
    %c384 = arith.constant 384 : index
    %105 = vector.load %arg5[%c0_123, %c0_124, %c384] : memref<1x16x1024xbf16, #tpu.memory_space<vmem>>, vector<1x16x128xbf16>
    %106 = vector.shape_cast %105 : vector<1x16x128xbf16> to vector<16x128xbf16>
    %107 = vector.shape_cast %104 : vector<16x128xbf16> to vector<1x16x128xbf16>
    tpu.vector_store %arg5[%c0_123, %c0_124, %c384], %107 {strides = array<i32>} : memref<1x16x1024xbf16, #tpu.memory_space<vmem>>, vector<1x16x128xbf16>,
    %cst_125 = arith.constant 0.000000e+00 : f32
    %108 = vector.broadcast %cst_125 : f32 to vector<16x128xf32>
    %c0_126 = arith.constant 0 : index
    %c0_127 = arith.constant 0 : index
    %c0_128 = arith.constant 0 : index
    %c32 = arith.constant 32 : index
    %109 = vector.load %arg2[%c0_126, %c0_127, %c0_128, %c32] : memref<1x1x32x64xbf16, #tpu.memory_space<vmem>>, vector<1x1x16x8xbf16>
    %110 = vector.shape_cast %109 : vector<1x1x16x8xbf16> to vector<16x8xbf16>
    %c0_129 = arith.constant 0 : index
    %c0_130 = arith.constant 0 : index
    %c32_131 = arith.constant 32 : index
    %c0_132 = arith.constant 0 : index
    %111 = vector.load %arg3[%c0_129, %c0_130, %c32_131, %c0_132] : memref<1x3x64x128xbf16, #tpu.memory_space<vmem>>, vector<1x1x8x128xbf16>
    %112 = vector.shape_cast %111 : vector<1x1x8x128xbf16> to vector<8x128xbf16>
    %cst_133 = arith.constant dense<0.000000e+00> : vector<16x128xf32>
    %113 = tpu.matmul %110, %112, %cst_133 {dimension_numbers = #tpu.dot_dimension_numbers<[1], [0], [0], [1], [0, 0, 1, 1], [], []>} : vector<16x8xbf16>, vector<8x128xbf16>, vector<16x128xf32> -> vector<16x128xf32>
    %114 = arith.addf %108, %113 : vector<16x128xf32>
    %c0_134 = arith.constant 0 : index
    %c0_135 = arith.constant 0 : index
    %c1_136 = arith.constant 1 : index
    %c32_137 = arith.constant 32 : index
    %115 = vector.load %arg2[%c0_134, %c0_135, %c1_136, %c32_137] : memref<1x1x32x64xbf16, #tpu.memory_space<vmem>>, vector<1x1x16x8xbf16>
    %116 = vector.shape_cast %115 : vector<1x1x16x8xbf16> to vector<16x8xbf16>
    %c0_138 = arith.constant 0 : index
    %c1_139 = arith.constant 1 : index
    %c32_140 = arith.constant 32 : index
    %c0_141 = arith.constant 0 : index
    %117 = vector.load %arg3[%c0_138, %c1_139, %c32_140, %c0_141] : memref<1x3x64x128xbf16, #tpu.memory_space<vmem>>, vector<1x1x8x128xbf16>
    %118 = vector.shape_cast %117 : vector<1x1x8x128xbf16> to vector<8x128xbf16>
    %cst_142 = arith.constant dense<0.000000e+00> : vector<16x128xf32>
    %119 = tpu.matmul %116, %118, %cst_142 {dimension_numbers = #tpu.dot_dimension_numbers<[1], [0], [0], [1], [0, 0, 1, 1], [], []>} : vector<16x8xbf16>, vector<8x128xbf16>, vector<16x128xf32> -> vector<16x128xf32>
    %120 = arith.addf %114, %119 : vector<16x128xf32>
    %c0_143 = arith.constant 0 : index
    %c0_144 = arith.constant 0 : index
    %c2_145 = arith.constant 2 : index
    %c32_146 = arith.constant 32 : index
    %121 = vector.load %arg2[%c0_143, %c0_144, %c2_145, %c32_146] : memref<1x1x32x64xbf16, #tpu.memory_space<vmem>>, vector<1x1x16x8xbf16>
    %122 = vector.shape_cast %121 : vector<1x1x16x8xbf16> to vector<16x8xbf16>
    %c0_147 = arith.constant 0 : index
    %c2_148 = arith.constant 2 : index
    %c32_149 = arith.constant 32 : index
    %c0_150 = arith.constant 0 : index
    %123 = vector.load %arg3[%c0_147, %c2_148, %c32_149, %c0_150] : memref<1x3x64x128xbf16, #tpu.memory_space<vmem>>, vector<1x1x8x128xbf16>
    %124 = vector.shape_cast %123 : vector<1x1x8x128xbf16> to vector<8x128xbf16>
    %cst_151 = arith.constant dense<0.000000e+00> : vector<16x128xf32>
    %125 = tpu.matmul %122, %124, %cst_151 {dimension_numbers = #tpu.dot_dimension_numbers<[1], [0], [0], [1], [0, 0, 1, 1], [], []>} : vector<16x8xbf16>, vector<8x128xbf16>, vector<16x128xf32> -> vector<16x128xf32>
    %126 = arith.addf %120, %125 : vector<16x128xf32>
    %c0_152 = arith.constant 0 : index
    %c4 = arith.constant 4 : index
    %c0_153 = arith.constant 0 : index
    %127 = vector.load %arg4[%c0_152, %c4, %c0_153] : memref<1x8x128xf32, #tpu.memory_space<vmem>>, vector<1x1x128xf32>
    %128 = vector.shape_cast %127 : vector<1x1x128xf32> to vector<1x128xf32>
    %129 = vector.broadcast %128 : vector<1x128xf32> to vector<16x128xf32>
    %130 = arith.addf %126, %129 : vector<16x128xf32>
    %131 = arith.truncf %130 : vector<16x128xf32> to vector<16x128xbf16>
    %c0_154 = arith.constant 0 : index
    %c0_155 = arith.constant 0 : index
    %c512 = arith.constant 512 : index
    %132 = vector.load %arg5[%c0_154, %c0_155, %c512] : memref<1x16x1024xbf16, #tpu.memory_space<vmem>>, vector<1x16x128xbf16>
    %133 = vector.shape_cast %132 : vector<1x16x128xbf16> to vector<16x128xbf16>
    %134 = vector.shape_cast %131 : vector<16x128xbf16> to vector<1x16x128xbf16>
    tpu.vector_store %arg5[%c0_154, %c0_155, %c512], %134 {strides = array<i32>} : memref<1x16x1024xbf16, #tpu.memory_space<vmem>>, vector<1x16x128xbf16>,
    %cst_156 = arith.constant 0.000000e+00 : f32
    %135 = vector.broadcast %cst_156 : f32 to vector<16x128xf32>
    %c0_157 = arith.constant 0 : index
    %c0_158 = arith.constant 0 : index
    %c0_159 = arith.constant 0 : index
    %c40 = arith.constant 40 : index
    %136 = vector.load %arg2[%c0_157, %c0_158, %c0_159, %c40] : memref<1x1x32x64xbf16, #tpu.memory_space<vmem>>, vector<1x1x16x8xbf16>
    %137 = vector.shape_cast %136 : vector<1x1x16x8xbf16> to vector<16x8xbf16>
    %c0_160 = arith.constant 0 : index
    %c0_161 = arith.constant 0 : index
    %c40_162 = arith.constant 40 : index
    %c0_163 = arith.constant 0 : index
    %138 = vector.load %arg3[%c0_160, %c0_161, %c40_162, %c0_163] : memref<1x3x64x128xbf16, #tpu.memory_space<vmem>>, vector<1x1x8x128xbf16>
    %139 = vector.shape_cast %138 : vector<1x1x8x128xbf16> to vector<8x128xbf16>
    %cst_164 = arith.constant dense<0.000000e+00> : vector<16x128xf32>
    %140 = tpu.matmul %137, %139, %cst_164 {dimension_numbers = #tpu.dot_dimension_numbers<[1], [0], [0], [1], [0, 0, 1, 1], [], []>} : vector<16x8xbf16>, vector<8x128xbf16>, vector<16x128xf32> -> vector<16x128xf32>
    %141 = arith.addf %135, %140 : vector<16x128xf32>
    %c0_165 = arith.constant 0 : index
    %c0_166 = arith.constant 0 : index
    %c1_167 = arith.constant 1 : index
    %c40_168 = arith.constant 40 : index
    %142 = vector.load %arg2[%c0_165, %c0_166, %c1_167, %c40_168] : memref<1x1x32x64xbf16, #tpu.memory_space<vmem>>, vector<1x1x16x8xbf16>
    %143 = vector.shape_cast %142 : vector<1x1x16x8xbf16> to vector<16x8xbf16>
    %c0_169 = arith.constant 0 : index
    %c1_170 = arith.constant 1 : index
    %c40_171 = arith.constant 40 : index
    %c0_172 = arith.constant 0 : index
    %144 = vector.load %arg3[%c0_169, %c1_170, %c40_171, %c0_172] : memref<1x3x64x128xbf16, #tpu.memory_space<vmem>>, vector<1x1x8x128xbf16>
    %145 = vector.shape_cast %144 : vector<1x1x8x128xbf16> to vector<8x128xbf16>
    %cst_173 = arith.constant dense<0.000000e+00> : vector<16x128xf32>
    %146 = tpu.matmul %143, %145, %cst_173 {dimension_numbers = #tpu.dot_dimension_numbers<[1], [0], [0], [1], [0, 0, 1, 1], [], []>} : vector<16x8xbf16>, vector<8x128xbf16>, vector<16x128xf32> -> vector<16x128xf32>
    %147 = arith.addf %141, %146 : vector<16x128xf32>
    %c0_174 = arith.constant 0 : index
    %c0_175 = arith.constant 0 : index
    %c2_176 = arith.constant 2 : index
    %c40_177 = arith.constant 40 : index
    %148 = vector.load %arg2[%c0_174, %c0_175, %c2_176, %c40_177] : memref<1x1x32x64xbf16, #tpu.memory_space<vmem>>, vector<1x1x16x8xbf16>
    %149 = vector.shape_cast %148 : vector<1x1x16x8xbf16> to vector<16x8xbf16>
    %c0_178 = arith.constant 0 : index
    %c2_179 = arith.constant 2 : index
    %c40_180 = arith.constant 40 : index
    %c0_181 = arith.constant 0 : index
    %150 = vector.load %arg3[%c0_178, %c2_179, %c40_180, %c0_181] : memref<1x3x64x128xbf16, #tpu.memory_space<vmem>>, vector<1x1x8x128xbf16>
    %151 = vector.shape_cast %150 : vector<1x1x8x128xbf16> to vector<8x128xbf16>
    %cst_182 = arith.constant dense<0.000000e+00> : vector<16x128xf32>
    %152 = tpu.matmul %149, %151, %cst_182 {dimension_numbers = #tpu.dot_dimension_numbers<[1], [0], [0], [1], [0, 0, 1, 1], [], []>} : vector<16x8xbf16>, vector<8x128xbf16>, vector<16x128xf32> -> vector<16x128xf32>
    %153 = arith.addf %147, %152 : vector<16x128xf32>
    %c0_183 = arith.constant 0 : index
    %c5 = arith.constant 5 : index
    %c0_184 = arith.constant 0 : index
    %154 = vector.load %arg4[%c0_183, %c5, %c0_184] : memref<1x8x128xf32, #tpu.memory_space<vmem>>, vector<1x1x128xf32>
    %155 = vector.shape_cast %154 : vector<1x1x128xf32> to vector<1x128xf32>
    %156 = vector.broadcast %155 : vector<1x128xf32> to vector<16x128xf32>
    %157 = arith.addf %153, %156 : vector<16x128xf32>
    %158 = arith.truncf %157 : vector<16x128xf32> to vector<16x128xbf16>
    %c0_185 = arith.constant 0 : index
    %c0_186 = arith.constant 0 : index
    %c640 = arith.constant 640 : index
    %159 = vector.load %arg5[%c0_185, %c0_186, %c640] : memref<1x16x1024xbf16, #tpu.memory_space<vmem>>, vector<1x16x128xbf16>
    %160 = vector.shape_cast %159 : vector<1x16x128xbf16> to vector<16x128xbf16>
    %161 = vector.shape_cast %158 : vector<16x128xbf16> to vector<1x16x128xbf16>
    tpu.vector_store %arg5[%c0_185, %c0_186, %c640], %161 {strides = array<i32>} : memref<1x16x1024xbf16, #tpu.memory_space<vmem>>, vector<1x16x128xbf16>,
    %cst_187 = arith.constant 0.000000e+00 : f32
    %162 = vector.broadcast %cst_187 : f32 to vector<16x128xf32>
    %c0_188 = arith.constant 0 : index
    %c0_189 = arith.constant 0 : index
    %c0_190 = arith.constant 0 : index
    %c48 = arith.constant 48 : index
    %163 = vector.load %arg2[%c0_188, %c0_189, %c0_190, %c48] : memref<1x1x32x64xbf16, #tpu.memory_space<vmem>>, vector<1x1x16x8xbf16>
    %164 = vector.shape_cast %163 : vector<1x1x16x8xbf16> to vector<16x8xbf16>
    %c0_191 = arith.constant 0 : index
    %c0_192 = arith.constant 0 : index
    %c48_193 = arith.constant 48 : index
    %c0_194 = arith.constant 0 : index
    %165 = vector.load %arg3[%c0_191, %c0_192, %c48_193, %c0_194] : memref<1x3x64x128xbf16, #tpu.memory_space<vmem>>, vector<1x1x8x128xbf16>
    %166 = vector.shape_cast %165 : vector<1x1x8x128xbf16> to vector<8x128xbf16>
    %cst_195 = arith.constant dense<0.000000e+00> : vector<16x128xf32>
    %167 = tpu.matmul %164, %166, %cst_195 {dimension_numbers = #tpu.dot_dimension_numbers<[1], [0], [0], [1], [0, 0, 1, 1], [], []>} : vector<16x8xbf16>, vector<8x128xbf16>, vector<16x128xf32> -> vector<16x128xf32>
    %168 = arith.addf %162, %167 : vector<16x128xf32>
    %c0_196 = arith.constant 0 : index
    %c0_197 = arith.constant 0 : index
    %c1_198 = arith.constant 1 : index
    %c48_199 = arith.constant 48 : index
    %169 = vector.load %arg2[%c0_196, %c0_197, %c1_198, %c48_199] : memref<1x1x32x64xbf16, #tpu.memory_space<vmem>>, vector<1x1x16x8xbf16>
    %170 = vector.shape_cast %169 : vector<1x1x16x8xbf16> to vector<16x8xbf16>
    %c0_200 = arith.constant 0 : index
    %c1_201 = arith.constant 1 : index
    %c48_202 = arith.constant 48 : index
    %c0_203 = arith.constant 0 : index
    %171 = vector.load %arg3[%c0_200, %c1_201, %c48_202, %c0_203] : memref<1x3x64x128xbf16, #tpu.memory_space<vmem>>, vector<1x1x8x128xbf16>
    %172 = vector.shape_cast %171 : vector<1x1x8x128xbf16> to vector<8x128xbf16>
    %cst_204 = arith.constant dense<0.000000e+00> : vector<16x128xf32>
    %173 = tpu.matmul %170, %172, %cst_204 {dimension_numbers = #tpu.dot_dimension_numbers<[1], [0], [0], [1], [0, 0, 1, 1], [], []>} : vector<16x8xbf16>, vector<8x128xbf16>, vector<16x128xf32> -> vector<16x128xf32>
    %174 = arith.addf %168, %173 : vector<16x128xf32>
    %c0_205 = arith.constant 0 : index
    %c0_206 = arith.constant 0 : index
    %c2_207 = arith.constant 2 : index
    %c48_208 = arith.constant 48 : index
    %175 = vector.load %arg2[%c0_205, %c0_206, %c2_207, %c48_208] : memref<1x1x32x64xbf16, #tpu.memory_space<vmem>>, vector<1x1x16x8xbf16>
    %176 = vector.shape_cast %175 : vector<1x1x16x8xbf16> to vector<16x8xbf16>
    %c0_209 = arith.constant 0 : index
    %c2_210 = arith.constant 2 : index
    %c48_211 = arith.constant 48 : index
    %c0_212 = arith.constant 0 : index
    %177 = vector.load %arg3[%c0_209, %c2_210, %c48_211, %c0_212] : memref<1x3x64x128xbf16, #tpu.memory_space<vmem>>, vector<1x1x8x128xbf16>
    %178 = vector.shape_cast %177 : vector<1x1x8x128xbf16> to vector<8x128xbf16>
    %cst_213 = arith.constant dense<0.000000e+00> : vector<16x128xf32>
    %179 = tpu.matmul %176, %178, %cst_213 {dimension_numbers = #tpu.dot_dimension_numbers<[1], [0], [0], [1], [0, 0, 1, 1], [], []>} : vector<16x8xbf16>, vector<8x128xbf16>, vector<16x128xf32> -> vector<16x128xf32>
    %180 = arith.addf %174, %179 : vector<16x128xf32>
    %c0_214 = arith.constant 0 : index
    %c6 = arith.constant 6 : index
    %c0_215 = arith.constant 0 : index
    %181 = vector.load %arg4[%c0_214, %c6, %c0_215] : memref<1x8x128xf32, #tpu.memory_space<vmem>>, vector<1x1x128xf32>
    %182 = vector.shape_cast %181 : vector<1x1x128xf32> to vector<1x128xf32>
    %183 = vector.broadcast %182 : vector<1x128xf32> to vector<16x128xf32>
    %184 = arith.addf %180, %183 : vector<16x128xf32>
    %185 = arith.truncf %184 : vector<16x128xf32> to vector<16x128xbf16>
    %c0_216 = arith.constant 0 : index
    %c0_217 = arith.constant 0 : index
    %c768 = arith.constant 768 : index
    %186 = vector.load %arg5[%c0_216, %c0_217, %c768] : memref<1x16x1024xbf16, #tpu.memory_space<vmem>>, vector<1x16x128xbf16>
    %187 = vector.shape_cast %186 : vector<1x16x128xbf16> to vector<16x128xbf16>
    %188 = vector.shape_cast %185 : vector<16x128xbf16> to vector<1x16x128xbf16>
    tpu.vector_store %arg5[%c0_216, %c0_217, %c768], %188 {strides = array<i32>} : memref<1x16x1024xbf16, #tpu.memory_space<vmem>>, vector<1x16x128xbf16>,
    %cst_218 = arith.constant 0.000000e+00 : f32
    %189 = vector.broadcast %cst_218 : f32 to vector<16x128xf32>
    %c0_219 = arith.constant 0 : index
    %c0_220 = arith.constant 0 : index
    %c0_221 = arith.constant 0 : index
    %c56 = arith.constant 56 : index
    %190 = vector.load %arg2[%c0_219, %c0_220, %c0_221, %c56] : memref<1x1x32x64xbf16, #tpu.memory_space<vmem>>, vector<1x1x16x8xbf16>
    %191 = vector.shape_cast %190 : vector<1x1x16x8xbf16> to vector<16x8xbf16>
    %c0_222 = arith.constant 0 : index
    %c0_223 = arith.constant 0 : index
    %c56_224 = arith.constant 56 : index
    %c0_225 = arith.constant 0 : index
    %192 = vector.load %arg3[%c0_222, %c0_223, %c56_224, %c0_225] : memref<1x3x64x128xbf16, #tpu.memory_space<vmem>>, vector<1x1x8x128xbf16>
    %193 = vector.shape_cast %192 : vector<1x1x8x128xbf16> to vector<8x128xbf16>
    %cst_226 = arith.constant dense<0.000000e+00> : vector<16x128xf32>
    %194 = tpu.matmul %191, %193, %cst_226 {dimension_numbers = #tpu.dot_dimension_numbers<[1], [0], [0], [1], [0, 0, 1, 1], [], []>} : vector<16x8xbf16>, vector<8x128xbf16>, vector<16x128xf32> -> vector<16x128xf32>
    %195 = arith.addf %189, %194 : vector<16x128xf32>
    %c0_227 = arith.constant 0 : index
    %c0_228 = arith.constant 0 : index
    %c1_229 = arith.constant 1 : index
    %c56_230 = arith.constant 56 : index
    %196 = vector.load %arg2[%c0_227, %c0_228, %c1_229, %c56_230] : memref<1x1x32x64xbf16, #tpu.memory_space<vmem>>, vector<1x1x16x8xbf16>
    %197 = vector.shape_cast %196 : vector<1x1x16x8xbf16> to vector<16x8xbf16>
    %c0_231 = arith.constant 0 : index
    %c1_232 = arith.constant 1 : index
    %c56_233 = arith.constant 56 : index
    %c0_234 = arith.constant 0 : index
    %198 = vector.load %arg3[%c0_231, %c1_232, %c56_233, %c0_234] : memref<1x3x64x128xbf16, #tpu.memory_space<vmem>>, vector<1x1x8x128xbf16>
    %199 = vector.shape_cast %198 : vector<1x1x8x128xbf16> to vector<8x128xbf16>
    %cst_235 = arith.constant dense<0.000000e+00> : vector<16x128xf32>
    %200 = tpu.matmul %197, %199, %cst_235 {dimension_numbers = #tpu.dot_dimension_numbers<[1], [0], [0], [1], [0, 0, 1, 1], [], []>} : vector<16x8xbf16>, vector<8x128xbf16>, vector<16x128xf32> -> vector<16x128xf32>
    %201 = arith.addf %195, %200 : vector<16x128xf32>
    %c0_236 = arith.constant 0 : index
    %c0_237 = arith.constant 0 : index
    %c2_238 = arith.constant 2 : index
    %c56_239 = arith.constant 56 : index
    %202 = vector.load %arg2[%c0_236, %c0_237, %c2_238, %c56_239] : memref<1x1x32x64xbf16, #tpu.memory_space<vmem>>, vector<1x1x16x8xbf16>
    %203 = vector.shape_cast %202 : vector<1x1x16x8xbf16> to vector<16x8xbf16>
    %c0_240 = arith.constant 0 : index
    %c2_241 = arith.constant 2 : index
    %c56_242 = arith.constant 56 : index
    %c0_243 = arith.constant 0 : index
    %204 = vector.load %arg3[%c0_240, %c2_241, %c56_242, %c0_243] : memref<1x3x64x128xbf16, #tpu.memory_space<vmem>>, vector<1x1x8x128xbf16>
    %205 = vector.shape_cast %204 : vector<1x1x8x128xbf16> to vector<8x128xbf16>
    %cst_244 = arith.constant dense<0.000000e+00> : vector<16x128xf32>
    %206 = tpu.matmul %203, %205, %cst_244 {dimension_numbers = #tpu.dot_dimension_numbers<[1], [0], [0], [1], [0, 0, 1, 1], [], []>} : vector<16x8xbf16>, vector<8x128xbf16>, vector<16x128xf32> -> vector<16x128xf32>
    %207 = arith.addf %201, %206 : vector<16x128xf32>
    %c0_245 = arith.constant 0 : index
    %c7 = arith.constant 7 : index
    %c0_246 = arith.constant 0 : index
    %208 = vector.load %arg4[%c0_245, %c7, %c0_246] : memref<1x8x128xf32, #tpu.memory_space<vmem>>, vector<1x1x128xf32>
    %209 = vector.shape_cast %208 : vector<1x1x128xf32> to vector<1x128xf32>
    %210 = vector.broadcast %209 : vector<1x128xf32> to vector<16x128xf32>
    %211 = arith.addf %207, %210 : vector<16x128xf32>
    %212 = arith.truncf %211 : vector<16x128xf32> to vector<16x128xbf16>
    %c0_247 = arith.constant 0 : index
    %c0_248 = arith.constant 0 : index
    %c896 = arith.constant 896 : index
    %213 = vector.load %arg5[%c0_247, %c0_248, %c896] : memref<1x16x1024xbf16, #tpu.memory_space<vmem>>, vector<1x16x128xbf16>
    %214 = vector.shape_cast %213 : vector<1x16x128xbf16> to vector<16x128xbf16>
    %215 = vector.shape_cast %212 : vector<16x128xbf16> to vector<1x16x128xbf16>
    tpu.vector_store %arg5[%c0_247, %c0_248, %c896], %215 {strides = array<i32>} : memref<1x16x1024xbf16, #tpu.memory_space<vmem>>, vector<1x16x128xbf16>,
    return
  }
  func.func @transform_0(%arg0: i32, %arg1: i32) -> (i32, i32, i32, i32) {
    %c0_i32 = arith.constant 0 : i32
    %c0_i32_0 = arith.constant 0 : i32
    %c0_i32_1 = arith.constant 0 : i32
    return %arg0, %arg1, %c0_i32, %c0_i32_0 : i32, i32, i32, i32
  }
  func.func @transform_1(%arg0: i32, %arg1: i32) -> (i32, i32, i32, i32) {
    %c0_i32 = arith.constant 0 : i32
    %c0_i32_0 = arith.constant 0 : i32
    %c0_i32_1 = arith.constant 0 : i32
    %c0_i32_2 = arith.constant 0 : i32
    return %arg0, %c0_i32, %c0_i32_0, %c0_i32_1 : i32, i32, i32, i32
  }
  func.func @transform_2(%arg0: i32, %arg1: i32) -> (i32, i32, i32) {
    %c0_i32 = arith.constant 0 : i32
    %c0_i32_0 = arith.constant 0 : i32
    %c0_i32_1 = arith.constant 0 : i32
    return %arg0, %c0_i32, %c0_i32_0 : i32, i32, i32
  }
  func.func @transform_3(%arg0: i32, %arg1: i32) -> (i32, i32, i32) {
    %c0_i32 = arith.constant 0 : i32
    %c0_i32_0 = arith.constant 0 : i32
    return %arg0, %arg1, %c0_i32 : i32, i32, i32
  }
}

</mosaic_0001>

<bundles_post_ra>
// kernel: linear_conv2d_forward.1
= control target key start
LH: loop header
LB: loop body
LE: loop exit
PB: predicated region body
PF: predicated region fallthrough
CT: control target
= control target key end

     0   :  { %s1477_s12 = smov 0   ;;  %s1479_s13 = smov 0   ;;  %s1738_s0 = inlined_call_operand.vmem [shape: bf16[2,2,32,64], index: 0, kind: input, shape index: {}]   ;;  %s1739_s1 = inlined_call_operand.vmem [shape: bf16[2,3,64,128], index: 1, kind: input, shape index: {}]   ;;  %s1740_s2 = inlined_call_operand.vmem [shape: f32[2,8,128], index: 2, kind: input, shape index: {}]   ;;  %s1741_s3 = inlined_call_operand.vmem [shape: bf16[2,32,1024], index: 3, kind: output, shape index: {}]  }
   0x1   :  { %s1481_s14 = smov 0   ;;  %s1483_s15 = smov 0  }
   0x2   :  { %s1485_s16 = smov 0  }
   0x3 LB: > { %s22_s17 = sadd.s32 1, %s1440_s14  ;;  %s25_s18 = sadd.s32 1, %s1444_s15  ;;  %s1448_s16 = sphi %s1485_s16, %s13_s16   ;;  %s1444_s15 = sphi %s1483_s15, %s1745_s15   ;;  %s1440_s14 = sphi %s1481_s14, %s1744_s14   ;;  %s1436_s13 = sphi %s1479_s13, %s1743_s13   ;;  %s1432_s12 = sphi %s1477_s12, %s1742_s12  }
   0x4   : > { %p23_p0 = scmp.ge.s32.totalorder %s22_s17, 2  ;;  %p1246_p1 = scmp.ge.s32.totalorder %s1448_s16, 1 }
   0x5   : > { %p176_p2 = scmp.lt.s32.totalorder %s1448_s16, 5 }
   0x6   : > { %s1747_s17 = smov (%p23_p0, %s22_s17), 0  ;;  %s1749_s18 = smov (!%p23_p0, %s25_s18), %s1444_s15 }
   0x7   : > { %p177_p3 = pnand %p1246_p1, %p176_p2  ;;  %p27_p4 = scmp.ge.s32.totalorder %s1749_s18, 2 }
   0x8   : > { %p218_p5 = scmp.lt.s32.totalorder (!%p177_p3), %s1436_s13, 1  ;;  %p220_p6 = scmp.lt.s32.totalorder (!%p177_p3), %s1432_s12, 1 }
   0x9   : > { %s1751_s18 = smov (%p27_p4, %s1749_s18), 0  ;;  %180 = sbr.rel (%p177_p3) target bundleno = 373 (0x175), region = 32 }
   0xa   : > { %s1450_s27 = smov (!%p177_p3), 112   ;;  %s1451_s28 = smov (!%p177_p3), 120  }
   0xb   : > { %s1452_s29 = smov (!%p177_p3), 104   ;;  %s1453_s7 = smov (!%p177_p3), 88  }
   0xc   : > { %s1454_s8 = smov (!%p177_p3), 96   ;;  %s1455_s9 = smov (!%p177_p3), 80  }
   0xd   : > { %s1456_s10 = smov (!%p177_p3), 72  }
   0xe   : > { %s1753_s13 = smov (!%p218_p5, %s1436_s13), 1  ;;  %vm322_vm0 = vcmask 1046528   ;;  %vm262_vm1 = vsmask.f32 7424  ;;  %vm279_vm2 = vcmask 1043456   ;;  %vm275_vm3 = vcmask 64512  }
   0xf   : > { %s221_s19 = scalar_select %p220_p6, %s1432_s12, 1 }
  0x10   : > { %s1248_s20 = sshll.u32 %s1753_s13, 3  ;;  %s1354_s30 = smul.u32 96, %s1753_s13 }
  0x11   : > { %s1247_s21 = sshll.u32 %s221_s19, 2 }
  0x12   : > { %s224_s22 = sadd.s32 %s1248_s20, %s1247_s21  ;;  %s1571_s6 = scalar_lea.vmem %s1739_s1, %s1354_s30 }
  0x13   : > { %s1249_s23 = sshll.u32 %s224_s22, 2  ;;  %v1256_v61 = vld [vmem:[%s1571_s6 + $0x20] sm:$0xf]  ;;  %s1631_s21 = scalar_lea.vmem %s1740_s2, %s1248_s20 }
  0x14   : > { %s1519_s26 = scalar_lea.vmem %s1738_s0, %s1249_s23  ;;  %v1259_v62 = vld [vmem:[%s1571_s6 + $0x40] sm:$0xf]  ;;  %s1252_s20 = sshll.u32 %s1432_s12, 1 }
  0x15   : > { %v1522_v0 = vld [vmem:[%s1519_s26] sm:$0xff]   ;;  %v359_v1 = vld [vmem:[%s1519_s26 + $0x8] sm:$0x1]  ;;  %p239_p7 = scmp.lt.s32.totalorder %s1252_s20, 3  ;;  %s1254_s23 = sshll.u32 %s1753_s13, 5 }
  0x16   : > { %v1333_v2 = vld [vmem:[%s1519_s26] sm:$0xf0]  ;;  %512 = vrot.lane.b32.xlu1 %v1522_v0, %s1450_s27  ;;  %v479_v3 = vshrl.u32 %v1522_v0, 16  ;;  %v481_v4 = vshll.u32 %v1522_v0, 16  ;;  %v366_v5 = vunpack.c.l.b16 %v359_v1  ;;  %v1334_v6 = vld [vmem:[%s1519_s26] sm:$0xe]  ;;  %403 = vrot.lane.b32.xlu2 %v1522_v0, %s1451_s28 }
  0x17   : > { %v468_v7 = vld [vmem:[%s1519_s26 + $0x8] sm:$0x1]  ;;  %v1335_v8 = vor.u32 %v1334_v6, %v1333_v2  ;;  %v1336_v29 = vld [vmem:[%s1519_s26] sm:$0xf0]  ;;  %v1337_v30 = vld [vmem:[%s1519_s26] sm:$0xe] }
  0x18   : > { %v475_v9 = vunpack.c.l.b16 %v468_v7  ;;  %v577_v10 = vld [vmem:[%s1519_s26 + $0x8] sm:$0x1]  ;;  %v483_v11 = vrot.slane %v481_v4, 1  ;;  %v368_v12 = vpack.c.b16 %v366_v5, %v366_v5  ;;  %v1338_v33 = vor.u32 %v1337_v30, %v1336_v29  ;;  %v1339_v34 = vld [vmem:[%s1519_s26] sm:$0xf0]  ;;  %s1755_s20 = smov (!%p239_p7, %s1252_s20), 3 }
  0x19   : > { %v584_v13 = vunpack.c.l.b16 %v577_v10  ;;  %v430_v14 = vrot.slane %v1335_v8, 1  ;;  %v795_v20 = vld [vmem:[%s1519_s26 + $0x8] sm:$0x1]  ;;  %v1340_v35 = vld [vmem:[%s1519_s26] sm:$0xe]  ;;  %v281_v1 = vsel %vm279_vm2, %v1256_v61, 0 }
  0x1a   : > { %v477_v15 = vpack.c.b16 %v475_v9, %v475_v9  ;;  %v1534_v16 = vor.u32 %v483_v11, %v479_v3  ;;  %v377_v17 = vshll.u32 %v368_v12, 16  ;;  %v431_v18 = vrot.slane %v368_v12, 1  ;;  %v904_v32 = vld [vmem:[%s1519_s26 + $0x8] sm:$0x1]  ;;  %v1342_v50 = vld [vmem:[%s1519_s26] sm:$0xf0]  ;;  %290 = vmatpush.bf16.msra.mxu0 %v281_v1 }
  0x1b   : > { %v586_v19 = vpack.c.b16 %v584_v13, %v584_v13  ;;  %v802_v25 = vunpack.c.l.b16 %v795_v20  ;;  %v539_v37 = vrot.slane %v1338_v33, 1  ;;  %v911_v40 = vunpack.c.l.b16 %v904_v32  ;;  %v686_v43 = vld [vmem:[%s1519_s26 + $0x8] sm:$0x1]  ;;  %v1343_v51 = vld [vmem:[%s1519_s26] sm:$0xe]  ;;  %s1253_s22 = sshll.u32 %s1755_s20, 3 }
  0x1c   : > { %v379_v21 = vrot.slane %v377_v17, 1  ;;  %v432_v22 = vsel %vm322_vm0, %v430_v14, %v431_v18  ;;  %v486_v23 = vshll.u32 %v477_v15, 16  ;;  %v540_v36 = vrot.slane %v477_v15, 1  ;;  %v1013_v60 = vld [vmem:[%s1519_s26 + $0x8] sm:$0x1]  ;;  %s243_s12 = sadd.s32 %s1254_s23, %s1253_s22 }
  0x1d   : > { %v595_v24 = vshll.u32 %v586_v19, 16  ;;  %v1542_v28 = vpack.c.b16 %v802_v25, %v802_v25  ;;  %v1341_v42 = vor.u32 %v1340_v35, %v1339_v34  ;;  %v693_v45 = vunpack.c.l.b16 %v686_v43  ;;  %v250_v63 = vld [vmem:[%s1571_s6] sm:$0xf]  ;;  %v251_v4 = vld [vmem:[%s1519_s26 + $0x8] sm:$0x1]  ;;  %s1255_s24 = sshll.u32 %s243_s12, 2 }
  0x1e   : > { %v380_v26 = vsel %vm262_vm1, %v1534_v16, %v379_v21  ;;  %433 = vrot.lane.b32.xlu1 %v432_v22, %s1451_s28  ;;  %621 = vrot.lane.b32.xlu2 %v1522_v0, %s1452_s29  ;;  %v488_v31 = vrot.slane %v486_v23, 1  ;;  %v541_v44 = vsel %vm322_vm0, %v539_v37, %v540_v36  ;;  %v1559_v47 = vpack.c.b16 %v911_v40, %v911_v40  ;;  %v1330_v6 = vld [vmem:[%s1519_s26] sm:$0xf0]  ;;  %v1331_v7 = vld [vmem:[%s1519_s26] sm:$0xe] }
  0x1f   : > { %381 = vrot.lane.b32.xlu0 %v380_v26, %s1451_s28  ;;  %v597_v27 = vrot.slane %v595_v24, 1  ;;  %v813_v39 = vshll.u32 %v1542_v28, 16  ;;  %v648_v48 = vrot.slane %v1341_v42, 1  ;;  %v649_v49 = vrot.slane %v586_v19, 1  ;;  %v1261_v12 = vld [vmem:[%s1571_s6 + $0x24] sm:$0xf] }
  0x20   : > { %v489_v41 = vsel %vm262_vm1, %v1534_v16, %v488_v31  ;;  %v695_v52 = vpack.c.b16 %v693_v45, %v693_v45  ;;  %v1344_v53 = vor.u32 %v1343_v51, %v1342_v50  ;;  %v922_v55 = vshll.u32 %v1559_v47, 16  ;;  %v1266_v13 = vld [vmem:[%s1571_s6 + $0x28] sm:$0xf]  ;;  %v1348_v24 = vld [vmem:[%s1519_s26] sm:$0xf0] }
  0x21   : > { %v598_v38 = vsel %vm262_vm1, %v1534_v16, %v597_v27  ;;  %v815_v46 = vrot.slane %v813_v39, 1  ;;  %v650_v56 = vsel %vm322_vm0, %v648_v48, %v649_v49  ;;  %v330_v2 = vsel %vm279_vm2, %v1259_v62, 0  ;;  %v1349_v25 = vld [vmem:[%s1519_s26] sm:$0xe]  ;;  %v1345_v29 = vld [vmem:[%s1519_s26] sm:$0xf0] }
  0x22   : > { %v757_v57 = vrot.slane %v1344_v53, 1  ;;  %v758_v58 = vrot.slane %v695_v52, 1  ;;  %v924_v59 = vrot.slane %v922_v55, 1  ;;  %v300_v3 = vsel %vm279_vm2, %v250_v63, 0  ;;  %339 = vmatpush.bf16.msra.mxu2 %v330_v2  ;;  %v1346_v30 = vld [vmem:[%s1519_s26] sm:$0xe] }
  0x23   : > { %v816_v54 = vsel %vm262_vm1, %v1534_v16, %v815_v46  ;;  %v259_v5 = vunpack.c.l.b16 %v251_v4  ;;  %v704_v8 = vshll.u32 %v695_v52, 16  ;;  %v1020_v10 = vunpack.c.l.b16 %v1013_v60  ;;  %309 = vmatpush.bf16.msra.mxu1 %v300_v3  ;;  %v1352_v42 = vld [vmem:[%s1519_s26] sm:$0xe]  ;;  %v358_v48 = vld [vmem:[%s1571_s6 + $0x4] sm:$0xf] }
  0x24   : > { %v925_v9 = vsel %vm262_vm1, %v1534_v16, %v924_v59  ;;  %v1332_v11 = vor.u32 %v1331_v7, %v1330_v6  ;;  %v759_v14 = vsel %vm322_vm0, %v757_v57, %v758_v58  ;;  %v387_v17 = vsel %vm279_vm2, %v1261_v12, 0  ;;  %v1264_v49 = vld [vmem:[%s1571_s6 + $0x44] sm:$0xf]  ;;  %v576_v55 = vld [vmem:[%s1571_s6 + $0xc] sm:$0xf] }
  0x25   : > { %v261_v15 = vpack.c.b16 %v259_v5, %v259_v5  ;;  %v496_v18 = vsel %vm279_vm2, %v1266_v13, 0  ;;  %396 = vmatpush.bf16.msra.mxu3 %v387_v17  ;;  %v1022_v22 = vpack.c.b16 %v1020_v10, %v1020_v10  ;;  %v706_v23 = vrot.slane %v704_v8, 1  ;;  %v1269_v57 = vld [vmem:[%s1571_s6 + $0x48] sm:$0xf]  ;;  %v1271_v58 = vld [vmem:[%s1571_s6 + $0x2c] sm:$0xf] }
  0x26   : > { %599 = vrot.lane.b32.xlu1 %v598_v38, %s1452_s29  ;;  %542 = vrot.lane.b32.xlu2 %v541_v44, %s1450_s27  ;;  %v323_v19 = vrot.slane %v1332_v11, 1  ;;  %v1350_v33 = vor.u32 %v1349_v25, %v1348_v24  ;;  %v1347_v35 = vor.u32 %v1346_v30, %v1345_v29  ;;  %v976_v38 = vrot.slane %v1559_v47, 1  ;;  %v1274_v63 = vld [vmem:[%s1571_s6 + $0x4c] sm:$0xf]  ;;  %v1276_v4 = vld [vmem:[%s1571_s6 + $0x30] sm:$0xf] }
  0x27   : > { %490 = vrot.lane.b32.xlu0 %v489_v41, %s1450_s27  ;;  %505 = vmatpush.bf16.msrb.mxu2 %v496_v18  ;;  %v271_v20 = vshll.u32 %v261_v15, 16  ;;  %v324_v21 = vrot.slane %v261_v15, 1  ;;  %v1031_v32 = vshll.u32 %v1022_v22, 16  ;;  %v707_v34 = vsel %vm262_vm1, %v1534_v16, %v706_v23  ;;  %v1351_v41 = vld [vmem:[%s1519_s26] sm:$0xf0]  ;;  %s1692_s26 = scalar_lea.vmem %s1741_s3, %s1255_s24 }
  0x28   : > { %1258 = vmatmul.msk.bf16.vlgmr.msra.gmra.mxu1 %vm275_vm3, %v1522_v0  ;;  %v975_v37 = vrot.slane %v1350_v33, 1  ;;  %v866_v39 = vrot.slane %v1347_v35, 1  ;;  %v867_v40 = vrot.slane %v1542_v28, 1  ;;  %v1353_v45 = vor.u32 %v1352_v42, %v1351_v41  ;;  %v685_v5 = vld [vmem:[%s1571_s6 + $0x10] sm:$0xf] }
  0x29   : > { %v273_v26 = vrot.slane %v271_v20, 1  ;;  %v325_v27 = vsel %vm322_vm0, %v323_v19, %v324_v21  ;;  %v1033_v36 = vrot.slane %v1031_v32, 1  ;;  %v1085_v47 = vrot.slane %v1022_v22, 1  ;;  %v1279_v8 = vld [vmem:[%s1571_s6 + $0x50] sm:$0xf] }
  0x2a   : > { %1260 = vmatmul.msk.bf16.vlgmr.msra.gmra.mxu2 %vm275_vm3, %v325_v27  ;;  %v868_v44 = vsel %vm322_vm0, %v866_v39, %v867_v40  ;;  %v1084_v46 = vrot.slane %v1353_v45, 1  ;;  %v409_v52 = vsel %vm279_vm2, %v358_v48, 0  ;;  %v439_v53 = vsel %vm279_vm2, %v1264_v49, 0  ;;  %v1281_v11 = vld [vmem:[%s1571_s6 + $0x34] sm:$0xf] }
  0x2b   : > { %v274_v31 = vsel %vm262_vm1, %v1534_v16, %v273_v26  ;;  %v1034_v43 = vsel %vm262_vm1, %v1534_v16, %v1033_v36  ;;  %v467_v16 = vld [vmem:[%s1571_s6 + $0x8] sm:$0xf]  ;;  %418 = vmatpush.bf16.msrb.mxu0 %v409_v52  ;;  %448 = vmatpush.bf16.msrb.mxu1 %v439_v53  ;;  %v548_v59 = vsel %vm279_vm2, %v1269_v57, 0  ;;  %v605_v60 = vsel %vm279_vm2, %v1271_v58, 0  ;;  %v794_v15 = vld [vmem:[%s1571_s6 + $0x14] sm:$0xf] }
  0x2c   : > { %1257 = vmatmul.msk.bf16.vlgmr.msra.gmra.mxu0 %vm275_vm3, %v274_v31  ;;  %v1086_v28 = vsel %vm322_vm0, %v1084_v46, %v1085_v47  ;;  %v518_v51 = vsel %vm279_vm2, %v467_v16, 0  ;;  %v657_v2 = vsel %vm279_vm2, %v1274_v63, 0  ;;  %v714_v6 = vsel %vm279_vm2, %v1276_v4, 0  ;;  %v1284_v17 = vld [vmem:[%s1571_s6 + $0x54] sm:$0xf] }
  0x2d   : > { %527 = vmatpush.bf16.msrb.mxu3 %v518_v51  ;;  %v736_v7 = vsel %vm279_vm2, %v685_v5, 0  ;;  %v823_v13 = vsel %vm279_vm2, %v1281_v11, 0  ;;  %v845_v18 = vsel %vm279_vm2, %v794_v15, 0  ;;  %v875_v19 = vsel %vm279_vm2, %v1284_v17, 0  ;;  %v1286_v20 = vld [vmem:[%s1571_s6 + $0x38] sm:$0xf] }
  0x2e   : > { %817 = vrot.lane.b32.xlu1 %v816_v54, %s1453_s7  ;;  %730 = vrot.lane.b32.xlu2 %v1522_v0, %s1454_s8  ;;  %v932_v21 = vsel %vm279_vm2, %v1286_v20, 0  ;;  %v903_v24 = vld [vmem:[%s1571_s6 + $0x18] sm:$0xf]  ;;  %v1291_v29 = vld [vmem:[%s1571_s6 + $0x3c] sm:$0xf] }
  0x2f   : > { %651 = vrot.lane.b32.xlu0 %v650_v56, %s1452_s29  ;;  %v627_v56 = vsel %vm279_vm2, %v576_v55, 0  ;;  %557 = vmatpush.bf16.msra.mxu0 %v548_v59  ;;  %v954_v26 = vsel %vm279_vm2, %v903_v24, 0  ;;  %v1289_v30 = vld [vmem:[%s1571_s6 + $0x58] sm:$0xf]  ;;  %v1041_v31 = vsel %vm279_vm2, %v1291_v29, 0 }
  0x30   : > { %636 = vmatpush.bf16.msra.mxu2 %v627_v56  ;;  %614 = vmatpush.bf16.msra.mxu1 %v605_v60  ;;  %v984_v32 = vsel %vm279_vm2, %v1289_v30, 0  ;;  %v1404_v17 = vld [vmem:[%s1631_s21 + $0x2] ss:$0 sm:$0xff] }
  0x36   : > { %926 = vrot.lane.b32.xlu1 %v925_v9, %s1455_s9  ;;  %948 = vrot.lane.b32.xlu2 %v1522_v0, %s1455_s9  ;;  %v766_v9 = vsel %vm279_vm2, %v1279_v8, 0 }
  0x37   : > { %760 = vrot.lane.b32.xlu0 %v759_v14, %s1454_s8 }
  0x3e   : > { %839 = vrot.lane.b32.xlu1 %v1522_v0, %s1453_s7  ;;  %1057 = vrot.lane.b32.xlu2 %v1522_v0, %s1456_s10  ;;  %v977_v0 = vsel %vm322_vm0, %v975_v37, %v976_v38  ;;  %v1294_v37 = vld [vmem:[%s1571_s6 + $0x5c] sm:$0xf] }
  0x3f   : > { %708 = vrot.lane.b32.xlu0 %v707_v34, %s1454_s8  ;;  %v1012_v34 = vld [vmem:[%s1571_s6 + $0x1c] sm:$0xf]  ;;  %v1093_v40 = vsel %vm279_vm2, %v1294_v37, 0 }
  0x40   : > { %v1063_v35 = vsel %vm279_vm2, %v1012_v34, 0 }
  0x46   : > { %1035 = vrot.lane.b32.xlu1 %v1034_v43, %s1456_s10  ;;  %978 = vrot.lane.b32.xlu2 %v977_v0, %s1455_s9 }
  0x47   : > { %869 = vrot.lane.b32.xlu0 %v868_v44, %s1453_s7  ;;  %v1402_v44 = vld [vmem:[%s1631_s21] ss:$0 sm:$0xff] }
  0x4f   : > { %1087 = vrot.lane.b32.xlu0 %v1086_v28, %s1456_s10 }
  0x70   : > { %v404_v50 = vpop.permute.xlu2 %403 }
  0x71   : > { %1263 = vmatmul.msk.bf16.vlgmr.msrb.gmra.mxu0 %vm275_vm3, %v404_v50 }
  0x72   : > { %723 = vmatpush.bf16.msrb.mxu0 %v714_v6 }
  0x78   : > { %v622_v54 = vpop.permute.xlu2 %621 }
  0x80   : > { %v543_v61 = vpop.permute.xlu2 %542 }
  0x81   : > { %1270 = vmatmul.msk.bf16.vlgmr.msra.gmra.mxu0 %vm275_vm3, %v543_v61 }
  0x82   : > { %854 = vmatpush.bf16.msra.mxu0 %v845_v18 }
  0x88   : > { %v513_v62 = vpop.permute.xlu1 %512  ;;  %v731_v25 = vpop.permute.xlu2 %730 }
  0x90   : > { %v434_v1 = vpop.permute.xlu1 %433  ;;  %v949_v36 = vpop.permute.xlu2 %948 }
  0x91   : > { %v382_v3 = vpop.permute.xlu0 %381  ;;  %1265 = vmatmul.msk.bf16.vlgmr.msrb.gmra.mxu1 %vm275_vm3, %v434_v1 }
  0x92   : > { %1262 = vmatmul.msk.bf16.vlgmr.msra.gmra.mxu3 %vm275_vm3, %v382_v3  ;;  %745 = vmatpush.bf16.msrb.mxu1 %v736_v7 }
  0x93   : > { %666 = vmatpush.bf16.msra.mxu3 %v657_v2 }
  0x98   : > { %v600_v12 = vpop.permute.xlu1 %599  ;;  %v1058_v45 = vpop.permute.xlu2 %1057 }
  0x99   : > { %v491_v10 = vpop.permute.xlu0 %490 }
  0x9a   : > { %1267 = vmatmul.msk.bf16.vlgmr.msrb.gmra.mxu2 %vm275_vm3, %v491_v10 }
  0x9b   : > { %775 = vmatpush.bf16.msrb.mxu2 %v766_v9 }
  0xa0   : > { %v818_v23 = vpop.permute.xlu1 %817  ;;  %v979_v53 = vpop.permute.xlu2 %978 }
  0xa1   : > { %v652_v14 = vpop.permute.xlu0 %651  ;;  %1272 = vmatmul.msk.bf16.vlgmr.msra.gmra.mxu1 %vm275_vm3, %v600_v12 }
  0xa2   : > { %1268 = vmatmul.msk.bf16.vlgmr.msrb.gmra.mxu3 %vm275_vm3, %v513_v62  ;;  %884 = vmatpush.bf16.msra.mxu1 %v875_v19  ;;  %v1403_v62 = vld [vmem:[%s1631_s21 + $0x1] ss:$0 sm:$0xff] }
  0xa3   : > { %832 = vmatpush.bf16.msrb.mxu3 %v823_v13 }
  0xa5   : > { %v311_v42 = vpop.f32.mrf.mxu1 }
  0xa8   : > { %v927_v33 = vpop.permute.xlu1 %926 }
  0xa9   : > { %v761_v22 = vpop.permute.xlu0 %760  ;;  %v292_v41 = vpop.f32.mrf.mxu0 }
  0xaa   : > { %1273 = vmatmul.msk.bf16.vlgmr.msra.gmra.mxu2 %vm275_vm3, %v622_v54  ;;  %v312_v43 = vadd.f32 %v311_v42, %v292_v41  ;;  %v1406_v42 = vld [vmem:[%s1631_s21 + $0x4] ss:$0 sm:$0xff] }
  0xab   : > { %941 = vmatpush.bf16.msra.mxu2 %v932_v21 }
  0xad   : > { %v341_v0 = vpop.f32.mrf.mxu2  ;;  %v313_v48 = vpop.f32.mrf.mxu1 }
  0xae   : > { %v346_v46 = vadd.f32 %v341_v0, %v312_v43 }
  0xb0   : > { %v840_v39 = vpop.permute.xlu1 %839  ;;  %v350_v47 = vadd.f32 %v1402_v44, %v346_v46 }
  0xb1   : > { %v709_v27 = vpop.permute.xlu0 %708  ;;  %1278 = vmatmul.msk.bf16.vlgmr.msrb.gmra.mxu1 %vm275_vm3, %v731_v25  ;;  %v294_v16 = vpop.f32.mrf.mxu0 }
  0xb2   : > { %1275 = vmatmul.msk.bf16.vlgmr.msra.gmra.mxu3 %vm275_vm3, %v652_v14  ;;  %1277 = vmatmul.msk.bf16.vlgmr.msrb.gmra.mxu0 %vm275_vm3, %v709_v27  ;;  %v352_v28 = vpack.c.bf16 %v350_v47, %v350_v47  ;;  %v314_v49 = vadd.f32 %v313_v48, %v294_v16 }
  0xb3   : > { %963 = vmatpush.bf16.msra.mxu3 %v954_v26  ;;  %1050 = vmatpush.bf16.msrb.mxu1 %v1041_v31 }
  0xb4   : > { %993 = vmatpush.bf16.msrb.mxu0 %v984_v32  ;;  %354 = vst [vmem:[%s1692_s26] sm:$0xf] %v352_v28  ;;  %v1405_v32 = vld [vmem:[%s1631_s21 + $0x3] ss:$0 sm:$0xff] }
  0xb5   : > { %v343_v50 = vpop.f32.mrf.mxu2 }
  0xb6   : > { %v347_v51 = vadd.f32 %v343_v50, %v314_v49 }
  0xb8   : > { %v1036_v52 = vpop.permute.xlu1 %1035  ;;  %v351_v54 = vadd.f32 %v1402_v44, %v347_v51 }
  0xb9   : > { %v870_v38 = vpop.permute.xlu0 %869 }
  0xba   : > { %1280 = vmatmul.msk.bf16.vlgmr.msrb.gmra.mxu2 %vm275_vm3, %v761_v22  ;;  %v353_v55 = vpack.c.bf16 %v351_v54, %v351_v54 }
  0xbb   : > { %1072 = vmatpush.bf16.msrb.mxu2 %v1063_v35 }
  0xbc   : > { %355 = vst [vmem:[%s1692_s26 + $0x20] sm:$0xf] %v353_v55  ;;  %v1407_v55 = vld [vmem:[%s1631_s21 + $0x5] ss:$0 sm:$0xff] }
  0xc1   : > { %1285 = vmatmul.msk.bf16.vlgmr.msra.gmra.mxu1 %vm275_vm3, %v870_v38  ;;  %v1088_v56 = vpop.permute.xlu0 %1087 }
  0xc2   : > { %1282 = vmatmul.msk.bf16.vlgmr.msrb.gmra.mxu3 %vm275_vm3, %v818_v23  ;;  %1283 = vmatmul.msk.bf16.vlgmr.msra.gmra.mxu0 %vm275_vm3, %v840_v39 }
  0xc3   : > { %1102 = vmatpush.bf16.msrb.mxu3 %v1093_v40 }
  0xca   : > { %1287 = vmatmul.msk.bf16.vlgmr.msra.gmra.mxu2 %vm275_vm3, %v927_v33 }
  0xd1   : > { %1292 = vmatmul.msk.bf16.vlgmr.msrb.gmra.mxu1 %vm275_vm3, %v1036_v52 }
  0xd2   : > { %1288 = vmatmul.msk.bf16.vlgmr.msra.gmra.mxu3 %vm275_vm3, %v949_v36  ;;  %1290 = vmatmul.msk.bf16.vlgmr.msrb.gmra.mxu0 %vm275_vm3, %v979_v53 }
  0xda   : > { %1293 = vmatmul.msk.bf16.vlgmr.msrb.gmra.mxu2 %vm275_vm3, %v1058_v45 }
  0xe2   : > { %1295 = vmatmul.msk.bf16.vlgmr.msrb.gmra.mxu3 %vm275_vm3, %v1088_v56 }
  0xee   : > { %v420_v57 = vpop.f32.mrf.mxu0 }
  0xf6   : > { %v422_v59 = vpop.f32.mrf.mxu0 }
  0xfe   : > { %v559_v3 = vpop.f32.mrf.mxu0 }
 0x106   : > { %v561_v12 = vpop.f32.mrf.mxu0 }
 0x10e   : > { %v450_v58 = vpop.f32.mrf.mxu1 }
 0x115   : > { %v398_v60 = vpop.f32.mrf.mxu3 }
 0x116   : > { %v421_v61 = vadd.f32 %v420_v57, %v398_v60  ;;  %v452_v63 = vpop.f32.mrf.mxu1 }
 0x118   : > { %v455_v1 = vadd.f32 %v450_v58, %v421_v61 }
 0x11a   : > { %v459_v2 = vadd.f32 %v1403_v62, %v455_v1 }
 0x11c   : > { %v461_v4 = vpack.c.bf16 %v459_v2, %v459_v2 }
 0x11d   : > { %v400_v5 = vpop.f32.mrf.mxu3  ;;  %v507_v6 = vpop.f32.mrf.mxu2 }
 0x11e   : > { %463 = vst [vmem:[%s1692_s26 + $0x4] sm:$0xf] %v461_v4  ;;  %v423_v7 = vadd.f32 %v422_v59, %v400_v5  ;;  %v616_v8 = vpop.f32.mrf.mxu1 }
 0x120   : > { %v456_v9 = vadd.f32 %v452_v63, %v423_v7 }
 0x122   : > { %v460_v10 = vadd.f32 %v1403_v62, %v456_v9 }
 0x124   : > { %v462_v11 = vpack.c.bf16 %v460_v10, %v460_v10  ;;  %v1408_v10 = vld [vmem:[%s1631_s21 + $0x6] ss:$0 sm:$0xff] }
 0x125   : > { %v509_v13 = vpop.f32.mrf.mxu2  ;;  %v529_v14 = vpop.f32.mrf.mxu3 }
 0x126   : > { %464 = vst [vmem:[%s1692_s26 + $0x24] sm:$0xf] %v462_v11  ;;  %v530_v15 = vadd.f32 %v529_v14, %v507_v6  ;;  %v618_v18 = vpop.f32.mrf.mxu1 }
 0x128   : > { %v564_v19 = vadd.f32 %v559_v3, %v530_v15 }
 0x12a   : > { %v568_v20 = vadd.f32 %v1404_v17, %v564_v19 }
 0x12c   : > { %v570_v21 = vpack.c.bf16 %v568_v20, %v568_v20 }
 0x12d   : > { %v531_v22 = vpop.f32.mrf.mxu3  ;;  %v638_v23 = vpop.f32.mrf.mxu2 }
 0x12e   : > { %572 = vst [vmem:[%s1692_s26 + $0x8] sm:$0xf] %v570_v21  ;;  %v532_v24 = vadd.f32 %v531_v22, %v509_v13  ;;  %v747_v25 = vpop.f32.mrf.mxu1  ;;  %v639_v30 = vadd.f32 %v638_v23, %v616_v8 }
 0x12f   : > { %v725_v26 = vpop.f32.mrf.mxu0 }
 0x130   : > { %v565_v27 = vadd.f32 %v561_v12, %v532_v24  ;;  %v748_v40 = vadd.f32 %v747_v25, %v725_v26  ;;  %v1409_v24 = vld [vmem:[%s1631_s21 + $0x7] ss:$0 sm:$0xff] }
 0x132   : > { %v569_v29 = vadd.f32 %v1404_v17, %v565_v27 }
 0x134   : > { %v571_v31 = vpack.c.bf16 %v569_v29, %v569_v29 }
 0x135   : > { %v640_v33 = vpop.f32.mrf.mxu2  ;;  %v668_v34 = vpop.f32.mrf.mxu3 }
 0x136   : > { %573 = vst [vmem:[%s1692_s26 + $0x28] sm:$0xf] %v571_v31  ;;  %v673_v35 = vadd.f32 %v668_v34, %v639_v30  ;;  %v749_v38 = vpop.f32.mrf.mxu1  ;;  %v641_v41 = vadd.f32 %v640_v33, %v618_v18 }
 0x137   : > { %v727_v36 = vpop.f32.mrf.mxu0 }
 0x138   : > { %v677_v37 = vadd.f32 %v1405_v32, %v673_v35  ;;  %v750_v49 = vadd.f32 %v749_v38, %v727_v36 }
 0x13a   : > { %v679_v39 = vpack.c.bf16 %v677_v37, %v677_v37 }
 0x13c   : > { %681 = vst [vmem:[%s1692_s26 + $0xc] sm:$0xf] %v679_v39 }
 0x13d   : > { %v670_v43 = vpop.f32.mrf.mxu3  ;;  %v777_v0 = vpop.f32.mrf.mxu2 }
 0x13e   : > { %v674_v44 = vadd.f32 %v670_v43, %v641_v41  ;;  %v782_v45 = vadd.f32 %v777_v0, %v748_v40  ;;  %v886_v50 = vpop.f32.mrf.mxu1 }
 0x13f   : > { %v856_v28 = vpop.f32.mrf.mxu0 }
 0x140   : > { %v678_v46 = vadd.f32 %v1405_v32, %v674_v44  ;;  %v786_v47 = vadd.f32 %v1406_v42, %v782_v45 }
 0x142   : > { %v680_v16 = vpack.c.bf16 %v678_v46, %v678_v46  ;;  %v788_v48 = vpack.c.bf16 %v786_v47, %v786_v47 }
 0x144   : > { %682 = vst [vmem:[%s1692_s26 + $0x2c] sm:$0xf] %v680_v16 }
 0x145   : > { %790 = vst [vmem:[%s1692_s26 + $0x10] sm:$0xf] %v788_v48  ;;  %v779_v51 = vpop.f32.mrf.mxu2  ;;  %v834_v52 = vpop.f32.mrf.mxu3 }
 0x146   : > { %v783_v53 = vadd.f32 %v779_v51, %v750_v49  ;;  %v857_v54 = vadd.f32 %v856_v28, %v834_v52  ;;  %v888_v62 = vpop.f32.mrf.mxu1 }
 0x147   : > { %v858_v60 = vpop.f32.mrf.mxu0 }
 0x148   : > { %v787_v56 = vadd.f32 %v1406_v42, %v783_v53  ;;  %v891_v57 = vadd.f32 %v886_v50, %v857_v54 }
 0x14a   : > { %v789_v58 = vpack.c.bf16 %v787_v56, %v787_v56  ;;  %v895_v59 = vadd.f32 %v1407_v55, %v891_v57 }
 0x14c   : > { %791 = vst [vmem:[%s1692_s26 + $0x30] sm:$0xf] %v789_v58  ;;  %v897_v61 = vpack.c.bf16 %v895_v59, %v895_v59 }
 0x14d   : > { %v836_v63 = vpop.f32.mrf.mxu3  ;;  %v943_v1 = vpop.f32.mrf.mxu2 }
 0x14e   : > { %899 = vst [vmem:[%s1692_s26 + $0x14] sm:$0xf] %v897_v61  ;;  %v859_v2 = vadd.f32 %v858_v60, %v836_v63  ;;  %v1052_v20 = vpop.f32.mrf.mxu1 }
 0x14f   : > { %v995_v5 = vpop.f32.mrf.mxu0 }
 0x150   : > { %v892_v3 = vadd.f32 %v888_v62, %v859_v2 }
 0x152   : > { %v896_v4 = vadd.f32 %v1407_v55, %v892_v3 }
 0x154   : > { %v898_v6 = vpack.c.bf16 %v896_v4, %v896_v4 }
 0x155   : > { %v945_v7 = vpop.f32.mrf.mxu2  ;;  %v965_v8 = vpop.f32.mrf.mxu3 }
 0x156   : > { %900 = vst [vmem:[%s1692_s26 + $0x34] sm:$0xf] %v898_v6  ;;  %v966_v9 = vadd.f32 %v965_v8, %v943_v1  ;;  %v1054_v31 = vpop.f32.mrf.mxu1 }
 0x157   : > { %v997_v15 = vpop.f32.mrf.mxu0 }
 0x158   : > { %v1000_v11 = vadd.f32 %v995_v5, %v966_v9 }
 0x15a   : > { %v1004_v12 = vadd.f32 %v1408_v10, %v1000_v11 }
 0x15c   : > { %v1006_v13 = vpack.c.bf16 %v1004_v12, %v1004_v12 }
 0x15d   : > { %v967_v14 = vpop.f32.mrf.mxu3  ;;  %v1074_v18 = vpop.f32.mrf.mxu2 }
 0x15e   : > { %1008 = vst [vmem:[%s1692_s26 + $0x18] sm:$0xf] %v1006_v13  ;;  %v968_v17 = vadd.f32 %v967_v14, %v945_v7  ;;  %v1075_v21 = vadd.f32 %v1074_v18, %v1052_v20 }
 0x160   : > { %v1001_v19 = vadd.f32 %v997_v15, %v968_v17 }
 0x162   : > { %v1005_v22 = vadd.f32 %v1408_v10, %v1001_v19 }
 0x164   : > { %v1007_v23 = vpack.c.bf16 %v1005_v22, %v1005_v22 }
 0x165   : > { %v1104_v25 = vpop.f32.mrf.mxu3  ;;  %v1076_v29 = vpop.f32.mrf.mxu2 }
 0x166   : > { %1009 = vst [vmem:[%s1692_s26 + $0x38] sm:$0xf] %v1007_v23  ;;  %v1109_v26 = vadd.f32 %v1104_v25, %v1075_v21  ;;  %v1077_v32 = vadd.f32 %v1076_v29, %v1054_v31 }
 0x168   : > { %v1113_v27 = vadd.f32 %v1409_v24, %v1109_v26 }
 0x16a   : > { %v1115_v30 = vpack.c.bf16 %v1113_v27, %v1113_v27 }
 0x16c   : > { %1117 = vst [vmem:[%s1692_s26 + $0x1c] sm:$0xf] %v1115_v30 }
 0x16d   : > { %v1106_v33 = vpop.f32.mrf.mxu3 }
 0x16e   : > { %v1110_v34 = vadd.f32 %v1106_v33, %v1077_v32 }
 0x170   : > { %v1114_v35 = vadd.f32 %v1409_v24, %v1110_v34 }
 0x172   : > { %v1116_v36 = vpack.c.bf16 %v1114_v35, %v1114_v35 }
 0x174   : > { %1118 = vst [vmem:[%s1692_s26 + $0x3c] sm:$0xf] %v1116_v36 }
 0x175 PF: > { %s13_s16 = sadd.s32 1, %s1448_s16   ;;  %s1742_s12 = smov %s1440_s14 }
 0x176   : > { %p10_p8 = scmp.ge.s32.totalorder %s13_s16, 6   ;;  %s1743_s13 = smov %s1444_s15 }
 0x177   : > { %s1744_s14 = smov %s1747_s17  ;;  %s1745_s15 = smov %s1751_s18 }
 0x178   :  { %12 = sbr.rel (!%p10_p8) target bundleno = 3 (0x3), region = 70 }

</bundles_post_ra>
